<compile_context>
chip_gen: v5e
topology: v5e:2x2
jax: 0.10.0
libtpu: 0.0.40
codegen_flags: <defaults>
</compile_context>

<pallas_src>
import functools
import math

import numpy as np
import jax
import jax.numpy as jnp
from jax import lax
from jax.experimental import pallas as pl
from jax.experimental.pallas import tpu as pltpu


def _round8(n):
    return ((n + 7) // 8) * 8


# ----------------------------------------------------------------------------
# Generic fused matmul:  out = relu?((prologue?(A) @ W [+ add]) * scale + shift)
# Used for: stem conv (im2col), all 1x1 convs, upsample+add, MP pre / head.
# ----------------------------------------------------------------------------

def _fmm_kernel(*refs, relu, prologue, epilogue, has_add):
    idx = 0
    a_ref = refs[idx]; idx += 1
    w_ref = refs[idx]; idx += 1
    if prologue:
        ps_ref = refs[idx]; pb_ref = refs[idx + 1]; idx += 2
    if epilogue:
        es_ref = refs[idx]; eb_ref = refs[idx + 1]; idx += 2
    if has_add:
        add_ref = refs[idx]; idx += 1
    o_ref = refs[idx]

    if prologue:
        a = jnp.maximum(a_ref[...].astype(jnp.float32) * ps_ref[...] + pb_ref[...], 0.0)
        a16 = a.astype(jnp.bfloat16)
    else:
        a16 = a_ref[...].astype(jnp.bfloat16)
    y = jnp.dot(a16, w_ref[...].astype(jnp.bfloat16),
                preferred_element_type=jnp.float32)
    if has_add:
        y = y + add_ref[...].astype(jnp.float32)
    if epilogue:
        y = y * es_ref[...] + eb_ref[...]
    if relu:
        y = jnp.maximum(y, 0.0)
    o_ref[...] = y.astype(o_ref.dtype)


def fused_matmul(a, w, scale=None, shift=None, add=None, pro_scale=None,
                 pro_shift=None, *, relu=False, out_dtype=jnp.float32):
    """a: (M, K); w: (K, N); scale/shift: (1, N); pro_*: (1, K); add: (M, N)."""
    M = a.shape[0]
    N = w.shape[-1]
    prologue = pro_scale is not None
    epilogue = scale is not None
    has_add = add is not None
    ops = [a, w]
    if prologue:
        ops += [pro_scale, pro_shift]
    if epilogue:
        ops += [scale, shift]
    if has_add:
        ops += [add]
    kern = functools.partial(_fmm_kernel, relu=relu, prologue=prologue,
                             epilogue=epilogue, has_add=has_add)
    return pl.pallas_call(
        kern, out_shape=jax.ShapeDtypeStruct((M, N), out_dtype))(*ops)


# ----------------------------------------------------------------------------
# In-kernel kxk conv helper: operand lives in a zero-padded VMEM scratch
# (flattened H*W rows, channels on lanes). KH taps are row-shifted slices,
# KW taps are +-1.. element shifts masked at the row boundaries.
# w: (k, k*Cin, Cout), channel layout kw*Cin + ci.
# ----------------------------------------------------------------------------

def _conv_from_pad(pad_ref, r0, H, W, k, w, col):
    M = H * W
    p = (k - 1) // 2
    acc = None
    for kh in range(k):
        parts = []
        for kw in range(k):
            dw = kw - p
            start = r0 + (kh - p) * W + dw
            a = pad_ref[pl.ds(start, M), :]
            if dw < 0:
                a = jnp.where(col >= -dw, a, jnp.zeros_like(a))
            elif dw > 0:
                a = jnp.where(col < W - dw, a, jnp.zeros_like(a))
            parts.append(a)
        a_kh = jnp.concatenate(parts, axis=-1).astype(jnp.bfloat16)
        d = jnp.dot(a_kh, w[kh].astype(jnp.bfloat16),
                    preferred_element_type=jnp.float32)
        acc = d if acc is None else acc + d
    return acc


# ----------------------------------------------------------------------------
# Whole Bottleneck in a single pallas_call.
# ----------------------------------------------------------------------------

def _bneck_kernel(*refs, H, W, r0, has_ds, use_pre):
    idx = 0
    x_ref = refs[idx]; idx += 1
    w1_ref = refs[idx]; idx += 1
    w2_ref = refs[idx]; idx += 1
    w3_ref = refs[idx]; idx += 1
    if has_ds:
        wds_ref = refs[idx]; idx += 1
    if use_pre:
        ps_ref = refs[idx]; pb_ref = refs[idx + 1]; idx += 2
    s2_ref = refs[idx]; b2_ref = refs[idx + 1]; idx += 2
    s3_ref = refs[idx]; b3_ref = refs[idx + 1]; idx += 2
    o_ref = refs[idx]; idx += 1
    pad_ref = refs[idx]

    M = H * W
    if use_pre:
        xa = jnp.maximum(x_ref[...].astype(jnp.float32) * ps_ref[...] + pb_ref[...], 0.0)
        a16 = xa.astype(jnp.bfloat16)
    else:
        a16 = x_ref[...].astype(jnp.bfloat16)

    # conv1 (1x1) -> bn2 -> relu
    h1 = jnp.dot(a16, w1_ref[...], preferred_element_type=jnp.float32)
    h1 = jnp.maximum(h1 * s2_ref[...] + b2_ref[...], 0.0)

    # residual: downsample conv shares the (prologue'd) LHS; otherwise raw x
    if has_ds:
        res = jnp.dot(a16, wds_ref[...], preferred_element_type=jnp.float32)
    else:
        res = x_ref[...].astype(jnp.float32)

    # conv2 (3x3) in-kernel -> bn3 -> relu
    pad_ref[...] = jnp.zeros_like(pad_ref)
    pad_ref[pl.ds(r0, M), :] = h1
    col = lax.broadcasted_iota(jnp.int32, (M, 1), 0) % W
    h2 = _conv_from_pad(pad_ref, r0, H, W, 3, w2_ref[...], col)
    h2 = jnp.maximum(h2 * s3_ref[...] + b3_ref[...], 0.0)

    # conv3 (1x1) + residual
    y = jnp.dot(h2.astype(jnp.bfloat16), w3_ref[...], preferred_element_type=jnp.float32)
    o_ref[...] = (y + res).astype(o_ref.dtype)


@functools.partial(jax.jit, static_argnames=("H", "W", "has_ds", "use_pre"))
def bottleneck_call(x, w1, w2, w3, wds, pre_s, pre_b, s2, b2, s3, b3,
                    *, H, W, has_ds, use_pre):
    M = H * W
    Cin = x.shape[-1]
    P = w1.shape[-1]
    cout = w3.shape[-1]
    r0 = _round8(W + 1)
    Mp = _round8(r0 + W + 1 + M)
    ops = [x.reshape(M, Cin), w1, w2, w3]
    if has_ds:
        ops.append(wds)
    if use_pre:
        ops += [pre_s, pre_b]
    ops += [s2, b2, s3, b3]
    kern = functools.partial(_bneck_kernel, H=H, W=W, r0=r0,
                             has_ds=has_ds, use_pre=use_pre)
    out = pl.pallas_call(
        kern,
        out_shape=jax.ShapeDtypeStruct((M, cout), jnp.bfloat16),
        scratch_shapes=[pltpu.VMEM((Mp, P), jnp.float32)],
    )(*ops)
    return out.reshape(1, H, W, cout)


def bottleneck_fwd(p, x, in_pro=None):
    # Matches the PyTorch reference: downsample bottlenecks do NOT apply bn1;
    # both conv1 and downsample take the (optionally in_pro-BN+ReLU'd) input.
    _, H, W, _ = x.shape
    if p["has_ds"]:
        use_pre = in_pro is not None
        pre_s, pre_b = in_pro if use_pre else (None, None)
        wds = p["wds"]
    else:
        use_pre = True
        pre_s, pre_b = p["bn1"]
        wds = None
    return bottleneck_call(x, p["w1"], p["w2"], p["w3"], wds, pre_s, pre_b,
                           p["bn2"][0], p["bn2"][1], p["bn3"][0], p["bn3"][1],
                           H=H, W=W, has_ds=p["has_ds"], use_pre=use_pre)


# ----------------------------------------------------------------------------
# MessagePassing "passing" chain: 7x7 conv -> BN -> ReLU -> 7x7 conv,
# both convs fully in-kernel.  Grid groups (G) run in parallel (inter pass G=26).
# ----------------------------------------------------------------------------

def _passing_kernel(r_ref, w1_ref, s1_ref, b1_ref, w2_ref, o_ref,
                    pad1_ref, pad2_ref, *, H, W, k, r0):
    M = H * W
    col = lax.broadcasted_iota(jnp.int32, (M, 1), 0) % W

    pad1_ref[...] = jnp.zeros_like(pad1_ref)
    pad1_ref[pl.ds(r0, M), :] = r_ref[0].astype(jnp.float32)
    h = _conv_from_pad(pad1_ref, r0, H, W, k, w1_ref[0], col)
    h = jnp.maximum(h * s1_ref[0] + b1_ref[0], 0.0)

    pad2_ref[...] = jnp.zeros_like(pad2_ref)
    pad2_ref[pl.ds(r0, M), :] = h
    y = _conv_from_pad(pad2_ref, r0, H, W, k, w2_ref[0], col)
    o_ref[0] = y.astype(o_ref.dtype)


def passing_call(r, w1, s1, b1, w2, *, H, W, k=7):
    """r: (G,M,cin); w1: (G,k,k*cin,mid); s1,b1: (G,1,mid); w2: (G,k,k*mid,cout)."""
    G, M, cin = r.shape
    mid = w1.shape[-1]
    cout = w2.shape[-1]
    p = (k - 1) // 2
    r0 = _round8(p * (W + 1))
    Mp = _round8(r0 + p * W + p + M)
    kern = functools.partial(_passing_kernel, H=H, W=W, k=k, r0=r0)
    return pl.pallas_call(
        kern,
        grid=(G,),
        in_specs=[pl.BlockSpec((1, M, cin), lambda g: (g, 0, 0)),
                  pl.BlockSpec((1, k, k * cin, mid), lambda g: (g, 0, 0, 0)),
                  pl.BlockSpec((1, 1, mid), lambda g: (g, 0, 0)),
                  pl.BlockSpec((1, 1, mid), lambda g: (g, 0, 0)),
                  pl.BlockSpec((1, k, k * mid, cout), lambda g: (g, 0, 0, 0))],
        out_specs=pl.BlockSpec((1, M, cout), lambda g: (g, 0, 0)),
        out_shape=jax.ShapeDtypeStruct((G, M, cout), jnp.float32),
        scratch_shapes=[pltpu.VMEM((Mp, cin), jnp.float32),
                        pltpu.VMEM((Mp, mid), jnp.float32)],
        compiler_params=pltpu.CompilerParams(dimension_semantics=("parallel",)),
    )(r, w1, s1, b1, w2)


# ----------------------------------------------------------------------------
# MaxPool kernels
# ----------------------------------------------------------------------------

def _pool2_kernel(x_ref, o_ref):
    a = x_ref[...]                                   # (Ho, 2, Wo, 2, C)
    m = jnp.maximum(a[:, 0], a[:, 1])                # (Ho, Wo, 2, C)
    o_ref[...] = jnp.maximum(m[:, :, 0, :], m[:, :, 1, :])


@jax.jit
def maxpool2x2(x):
    N, H, W, C = x.shape
    Ho, Wo = H // 2, W // 2
    xr = x.reshape(Ho, 2, Wo, 2, C)                  # free reshape view
    out = pl.pallas_call(
        _pool2_kernel,
        out_shape=jax.ShapeDtypeStruct((Ho, Wo, C), x.dtype))(xr)
    return out.reshape(N, Ho, Wo, C)


def _max_reduce_kernel(x_ref, o_ref):
    o_ref[...] = jnp.max(x_ref[...], axis=0)


@jax.jit
def maxpool3x3s2(x):
    # Single 3x3/s2/p1 pool (pool1). Runs once per forward; taps built in glue.
    N, H, W, C = x.shape
    Ho = (H + 2 - 3) // 2 + 1
    Wo = (W + 2 - 3) // 2 + 1
    xp = jnp.pad(x, ((0, 0), (1, 1), (1, 1), (0, 0)), constant_values=-jnp.inf)
    cols = []
    for kh in range(3):
        for kw in range(3):
            cols.append(xp[:, kh:kh + (Ho - 1) * 2 + 1:2,
                           kw:kw + (Wo - 1) * 2 + 1:2, :])
    xs = jnp.stack(cols, axis=0).reshape(9, N * Ho * Wo, C)
    out = pl.pallas_call(
        _max_reduce_kernel,
        out_shape=jax.ShapeDtypeStruct((N * Ho * Wo, C), x.dtype))(xs)
    return out.reshape(N, Ho, Wo, C)


# ----------------------------------------------------------------------------
# Stem (7x7 s2) + bilinear 2x upsample fused with the skip add
# ----------------------------------------------------------------------------

def _im2col(x, k, stride, pad):
    N, H, W, C = x.shape
    xp = jnp.pad(x, ((0, 0), (pad, pad), (pad, pad), (0, 0)))
    Ho = (H + 2 * pad - k) // stride + 1
    Wo = (W + 2 * pad - k) // stride + 1
    cols = []
    for kh in range(k):
        for kw in range(k):
            cols.append(xp[:, kh:kh + (Ho - 1) * stride + 1:stride,
                           kw:kw + (Wo - 1) * stride + 1:stride, :])
    patches = jnp.concatenate(cols, axis=-1)
    return patches.reshape(N, Ho * Wo, k * k * C), Ho, Wo


@jax.jit
def stem(x_nchw, w, scale, shift):
    x = jnp.transpose(x_nchw, (0, 2, 3, 1)).astype(jnp.float32)
    patches, Ho, Wo = _im2col(x, 7, 2, 3)
    patches = jnp.pad(patches, ((0, 0), (0, 0), (0, w.shape[0] - patches.shape[-1])))
    out = fused_matmul(patches[0].astype(jnp.bfloat16), w, scale, shift,
                       relu=True, out_dtype=jnp.bfloat16)
    return out.reshape(1, Ho, Wo, w.shape[-1])


def _interp_matrix(n_in, n_out):
    if n_in == 1:
        return np.ones((n_out, 1), np.float32)
    src = np.arange(n_out, dtype=np.float64) * (n_in - 1) / (n_out - 1)
    i0 = np.minimum(np.floor(src).astype(np.int64), n_in - 1)
    i1 = np.minimum(i0 + 1, n_in - 1)
    w1 = (src - i0).astype(np.float32)
    mat = np.zeros((n_out, n_in), np.float32)
    mat[np.arange(n_out), i0] += 1.0 - w1
    mat[np.arange(n_out), i1] += w1
    return mat


_UP_CACHE = {}


def _get_interp(H, W):
    key = (H, W)
    if key not in _UP_CACHE:
        _UP_CACHE[key] = jnp.asarray(
            np.kron(_interp_matrix(H, 2 * H), _interp_matrix(W, 2 * W)))
    return _UP_CACHE[key]


@jax.jit
def upsample2x_add(x, up1, mat):
    N, H, W, C = x.shape
    out = fused_matmul(mat, x.reshape(H * W, C),
                       add=up1.reshape(4 * H * W, C), out_dtype=jnp.bfloat16)
    return out.reshape(N, 2 * H, 2 * W, C)


# ----------------------------------------------------------------------------
# 1x1 conv wrapper (+ fused prologue/epilogue/add)
# ----------------------------------------------------------------------------

@functools.partial(jax.jit, static_argnames=("relu", "out_dtype"))
def conv1x1(x, w, scale=None, shift=None, add=None, pro_scale=None, pro_shift=None,
            *, relu=False, out_dtype=jnp.float32):
    N, H, W, C = x.shape
    M = H * W
    add_flat = None if add is None else add.reshape(M, -1)
    out = fused_matmul(x.reshape(M, C), w, scale, shift, add=add_flat,
                       pro_scale=pro_scale, pro_shift=pro_shift,
                       relu=relu, out_dtype=out_dtype)
    return out.reshape(N, H, W, -1)


# ----------------------------------------------------------------------------
# Parameter construction (mirrors the PyTorch module shapes, eval-mode BN)
# ----------------------------------------------------------------------------

class ParamGen:
    def __init__(self, seed=0):
        self.key = jax.random.PRNGKey(seed)

    def _next(self):
        self.key, k = jax.random.split(self.key)
        return k

    def conv(self, cin, cout, k):
        bound = math.sqrt(6.0 / (cin * k * k))     # kaiming_uniform_, fan_in
        return jax.random.uniform(self._next(), (k, k, cin, cout), jnp.float32,
                                  -bound, bound)

    def bn(self, c):
        scale = jnp.full((1, c), 1.0 / math.sqrt(1.0 + 1e-5), jnp.float32)
        shift = jnp.zeros((1, c), jnp.float32)
        return (scale, shift)


def make_bottleneck(pg, inplanes, planes):
    exp = 4
    p = {"has_ds": inplanes != planes * exp,
         "bn1": pg.bn(inplanes),
         "w1": pg.conv(inplanes, planes, 1).reshape(inplanes, planes).astype(jnp.bfloat16),
         "bn2": pg.bn(planes),
         "w2": pg.conv(planes, planes, 3).reshape(3, 3 * planes, planes).astype(jnp.bfloat16),
         "bn3": pg.bn(planes),
         "w3": pg.conv(planes, planes * exp, 1).reshape(planes, planes * exp).astype(jnp.bfloat16)}
    if p["has_ds"]:
        p["wds"] = pg.conv(inplanes, planes * exp, 1).reshape(
            inplanes, planes * exp).astype(jnp.bfloat16)
    return p


def make_hourglass(pg, planes=64, depth=4):
    hg = []
    for index in range(depth):
        res = [make_bottleneck(pg, planes * 4, planes) for _ in range(3)]
        if index == 0:
            res.append(make_bottleneck(pg, planes * 4, planes))
        hg.append(res)
    return {"hg": hg, "depth": depth}


def hourglass_fwd(p, x):
    hg = p["hg"]

    def rec(n, x):
        up1 = bottleneck_fwd(hg[n - 1][0], x)
        low1 = maxpool2x2(x)
        low1 = bottleneck_fwd(hg[n - 1][1], low1)
        low2 = rec(n - 1, low1) if n > 1 else bottleneck_fwd(hg[0][3], low1)
        low3 = bottleneck_fwd(hg[n - 1][2], low2)
        return upsample2x_add(low3, up1, _get_interp(low3.shape[1], low3.shape[2]))

    return rec(p["depth"], x)


# ----------------------------------------------------------------------------
# MessagePassing
# ----------------------------------------------------------------------------

PASS_ORDER = {"A": ["1", "13", "12", "11", "10", "5", "4", "7", "9", "6", "8", "2", "3"],
              "B": ["2", "3", "6", "8", "7", "9", "4", "5", "10", "11", "12", "13", "1"]}
BOUNDARY = {"A": {"1": ["2", "3", "7", "9", "13"], "2": [], "3": [], "4": ["7", "9"],
                  "5": ["4"], "6": ["2"], "7": ["6"], "8": ["3"], "9": ["8"],
                  "10": ["5"], "11": ["10"], "12": ["11"], "13": ["12"]},
            "B": {"1": [], "2": ["1", "6"], "3": ["1", "8"], "4": ["5"], "5": ["10"],
                  "6": ["7"], "7": ["1", "4"], "8": ["9"], "9": ["1", "4"],
                  "10": ["11"], "11": ["12"], "12": ["13"], "13": ["1"]}}


def _make_passing_params(pg):
    return (pg.conv(16, 8, 7), pg.bn(8), pg.conv(8, 16, 7))


def _group_node(passings):
    """Concatenate a node's target passes: conv1 along N (shared input), conv2 as a
    block-diagonal grouped matmul."""
    T = len(passings)
    w1 = jnp.concatenate([q[0] for q in passings], axis=-1)          # (7,7,16,8T)
    w1 = w1.reshape(7, 7 * 16, 8 * T).astype(jnp.bfloat16)
    s1 = jnp.concatenate([q[1][0] for q in passings], axis=-1)       # (1, 8T)
    b1 = jnp.concatenate([q[1][1] for q in passings], axis=-1)
    w2 = np.zeros((7, 7 * 8 * T, 16 * T), np.float32)
    for t, q in enumerate(passings):
        w2t = np.asarray(q[2])                                       # (7,7,8,16)
        for kw in range(7):
            w2[:, kw * 8 * T + t * 8:kw * 8 * T + (t + 1) * 8,
               t * 16:(t + 1) * 16] = w2t[:, kw]
    return {"w1": w1, "s1": s1, "b1": b1,
            "w2": jnp.asarray(w2, jnp.bfloat16), "T": T}


def make_mp(pg, first=0, last=0, classes=13, inchannels=256, channels=16):
    p = {"first": first, "last": last, "classes": classes, "channels": channels}
    pre_conv = [pg.conv(inchannels, channels, 1).reshape(inchannels, channels)
                for _ in range(2 * classes)]
    p["pre_w"] = jnp.concatenate(pre_conv, axis=1).astype(jnp.bfloat16)      # (256, 416)
    p["pre_bn"] = [pg.bn(channels) for _ in range(2 * classes)]
    aft_bn = [pg.bn(2 * channels) for _ in range(classes)]
    aft_conv = [pg.conv(2 * channels, 1, 1).reshape(2 * channels, 1) for _ in range(classes)]
    p["aft_ps"] = jnp.concatenate([b[0] for b in aft_bn], axis=-1)           # (1, 416)
    p["aft_pb"] = jnp.concatenate([b[1] for b in aft_bn], axis=-1)
    blk = np.zeros((classes * 2 * channels, classes), np.float32)
    for c in range(classes):
        blk[c * 2 * channels:(c + 1) * 2 * channels, c] = np.asarray(aft_conv[c][:, 0])
    p["aft_w"] = jnp.asarray(blk, jnp.bfloat16)                              # (416, 13)
    node = {"A": {}, "B": {}}
    for br in ("A", "B"):
        for item in PASS_ORDER[br]:
            targets = BOUNDARY[br][item]
            if not targets:
                continue
            node[br][item] = _group_node([_make_passing_params(pg) for _ in targets])
    p["node"] = node
    if last == 0:
        inter = [_make_passing_params(pg) for _ in range(2 * classes)]
        p["inter_w1"] = jnp.stack([q[0].reshape(7, 7 * 16, 8) for q in inter]).astype(jnp.bfloat16)
        p["inter_s1"] = jnp.stack([q[1][0] for q in inter])
        p["inter_b1"] = jnp.stack([q[1][1] for q in inter])
        p["inter_w2"] = jnp.stack([q[2].reshape(7, 7 * 8, 16) for q in inter]).astype(jnp.bfloat16)
    return p


@jax.jit
def _pre_split(temp, pre_w):
    N, H, W, C = temp.shape
    pre = fused_matmul(temp.reshape(H * W, C), pre_w)      # (M, 26*16) f32
    n = pre_w.shape[1] // 16
    return tuple(pre[:, i * 16:(i + 1) * 16] for i in range(n))


@jax.jit
def _prep_node(scale, shift, *addends):
    acc = addends[0]
    for a in addends[1:]:
        acc = acc + a
    return jnp.maximum(acc * scale + shift, 0.0)


@functools.partial(jax.jit, static_argnames=("H", "W", "T"))
def _node_step(scale, shift, w1, s1, b1, w2, *addends, H, W, T):
    acc = addends[0]
    for a in addends[1:]:
        acc = acc + a
    r = jnp.maximum(acc * scale + shift, 0.0)
    msgs = passing_call(r[None], w1[None], s1[None], b1[None], w2[None], H=H, W=W)[0]
    return (r,) + tuple(msgs[:, t * 16:(t + 1) * 16] for t in range(T))


@functools.partial(jax.jit, static_argnames=("H", "W"))
def _inter(w1, s1, b1, w2, *rs, H, W):
    r = jnp.stack(rs, axis=0)
    outs = passing_call(r, w1, s1, b1, w2, H=H, W=W)
    return tuple(outs[i] for i in range(outs.shape[0]))


@functools.partial(jax.jit, static_argnames=("H", "W"))
def _head(aft_w, aft_ps, aft_pb, *rs, H, W):
    xa = jnp.concatenate(rs, axis=-1)                                  # (M, 416)
    heat_flat = fused_matmul(xa, aft_w, pro_scale=aft_ps, pro_shift=aft_pb)
    heat = jnp.transpose(heat_flat.reshape(H, W, -1), (2, 0, 1))[None]  # (1,13,H,W)
    return heat, heat_flat


def mp_fwd(p, temp, ahead_msg):
    classes = p["classes"]
    _, H, W, _ = temp.shape
    pre_parts = _pre_split(temp, p["pre_w"])

    result_a, result_b = {}, {}
    msg_a = {str(i + 1): [] for i in range(classes)}
    msg_b = {str(i + 1): [] for i in range(classes)}
    for branch, offset, msg_box, result in (("A", 0, msg_a, result_a),
                                            ("B", classes, msg_b, result_b)):
        for index in range(classes):
            item = PASS_ORDER[branch][index]
            addends = [pre_parts[offset + index]] + list(msg_box[item])
            if p["first"] == 0:
                addends.append(ahead_msg[branch][item])
            s, b = p["pre_bn"][offset + index]
            targets = BOUNDARY[branch][item]
            if targets:
                nd = p["node"][branch][item]
                outs = _node_step(s, b, nd["w1"], nd["s1"], nd["b1"], nd["w2"],
                                  *addends, H=H, W=W, T=nd["T"])
                r = outs[0]
                for t, tgt in enumerate(targets):
                    msg_box[tgt].append(outs[1 + t])
            else:
                r = _prep_node(s, b, *addends)
            result[item] = r

    inter_msg = None
    if p["last"] == 0:
        rs = [result_a[PASS_ORDER["A"][i]] for i in range(classes)] + \
             [result_b[PASS_ORDER["B"][i]] for i in range(classes)]
        outs = _inter(p["inter_w1"], p["inter_s1"], p["inter_b1"], p["inter_w2"],
                      *rs, H=H, W=W)
        inter_msg = {"A": {PASS_ORDER["A"][i]: outs[i] for i in range(classes)},
                     "B": {PASS_ORDER["B"][i]: outs[classes + i] for i in range(classes)}}

    rs_head = []
    for c in range(classes):
        rs_head.append(result_a[str(c + 1)])
        rs_head.append(result_b[str(c + 1)])
    heat_nchw, heat_flat = _head(p["aft_w"], p["aft_ps"], p["aft_pb"],
                                 *rs_head, H=H, W=W)
    return heat_nchw, heat_flat, inter_msg


# ----------------------------------------------------------------------------
# Estimator
# ----------------------------------------------------------------------------

@jax.jit
def _stack_update(temp, heat_flat, out_prev, w_l2, s_l2, b_l2, w_l3):
    N, H, W, C = temp.shape
    M = H * W
    y1 = fused_matmul(temp.reshape(M, C), w_l2, add=out_prev.reshape(M, C),
                      pro_scale=s_l2, pro_shift=b_l2)
    y2 = fused_matmul(heat_flat, w_l3, add=y1, out_dtype=jnp.bfloat16)
    return y2.reshape(out_prev.shape)


def make_estimator(pg, stacks=2):
    p = {"stacks": stacks}
    w_stem = pg.conv(1, 64, 7).reshape(49, 64)
    p["conv1"] = jnp.pad(w_stem, ((0, 7), (0, 0))).astype(jnp.bfloat16)   # K -> 56
    p["conv1_bn"] = pg.bn(64)
    p["pre_res_1"] = make_bottleneck(pg, 64, 32)
    p["pre_res_2"] = make_bottleneck(pg, 128, 32)
    p["pre_res_2_bn"] = pg.bn(128)
    p["hourglass_0"] = make_bottleneck(pg, 128, 64)
    p["hg"], p["l1_res"], p["l1_bn"], p["l1_conv"] = [], [], [], []
    p["mp"], p["l2_bn"], p["l2_conv"], p["l3"] = [], [], [], []
    for i in range(stacks):
        p["hg"].append(make_hourglass(pg))
        p["l1_res"].append(make_bottleneck(pg, 256, 64))
        p["l1_bn"].append(pg.bn(256))
        p["l1_conv"].append(pg.conv(256, 256, 1).reshape(256, 256).astype(jnp.bfloat16))
        if i == 0:
            p["mp"].append(make_mp(pg, first=1, last=1 if stacks == 1 else 0))
        elif i == stacks - 1:
            p["mp"].append(make_mp(pg, last=1))
        else:
            p["mp"].append(make_mp(pg))
        if i != stacks - 1:
            p["l2_bn"].append(pg.bn(256))
            p["l2_conv"].append(pg.conv(256, 256, 1).reshape(256, 256).astype(jnp.bfloat16))
            p["l3"].append(pg.conv(13, 256, 1).reshape(13, 256).astype(jnp.bfloat16))
    return p


def estimator_fwd(p, x_nchw):
    out = stem(x_nchw, p["conv1"], p["conv1_bn"][0], p["conv1_bn"][1])     # (1,32,32,64)
    out = bottleneck_fwd(p["pre_res_1"], out)                              # (1,32,32,128)
    out = maxpool3x3s2(out)                                                # (1,16,16,128)
    out = bottleneck_fwd(p["pre_res_2"], out)
    # pre_res_2_bn + ReLU fused as the prologue of hourglass_0's conv1 / downsample
    out = bottleneck_fwd(p["hourglass_0"], out, in_pro=p["pre_res_2_bn"])  # (1,16,16,256)

    heatmaps = []
    inter_msg = None
    for i in range(p["stacks"]):
        tmp = hourglass_fwd(p["hg"][i], out)
        tmp = bottleneck_fwd(p["l1_res"][i], tmp)
        tmp = conv1x1(tmp, p["l1_conv"][i],
                      pro_scale=p["l1_bn"][i][0], pro_shift=p["l1_bn"][i][1],
                      out_dtype=jnp.bfloat16)
        heat_nchw, heat_flat, inter_next = mp_fwd(p["mp"][i], tmp, inter_msg)
        heatmaps.append(heat_nchw)
        if i != p["stacks"] - 1:
            out = _stack_update(tmp, heat_flat, out, p["l2_conv"][i],
                                p["l2_bn"][i][0], p["l2_bn"][i][1], p["l3"][i])
        inter_msg = inter_next
    return heatmaps


# ----------------------------------------------------------------------------

if __name__ == "__main__":
    stacks = 2   # structurally complete: first + last MessagePassing
    pg = ParamGen(seed=0)
    params = make_estimator(pg, stacks=stacks)

    # PyTorch-style NCHW grayscale input; 64x64 is the smallest spatial size
    # compatible with the stride-2 stem + pool + depth-4 hourglass.
    x = jax.random.normal(jax.random.PRNGKey(0), (1, 1, 64, 64), jnp.float32)

    heatmaps = estimator_fwd(params, x)
    heatmaps = [jax.block_until_ready(h) for h in heatmaps]

    assert len(heatmaps) == stacks
    for h in heatmaps:
        assert h.shape == (1, 13, 16, 16), h.shape
        assert bool(jnp.all(jnp.isfinite(h)))
    print("KERNEL_OK")
</pallas_src>

<mosaic_0001>
module attributes {stable_mosaic.version = 11 : i64} {
  func.func @_fmm_kernel(%arg0: memref<1024x56xbf16, #tpu.memory_space<vmem>>, %arg1: memref<56x64xbf16, #tpu.memory_space<vmem>>, %arg2: memref<1x64xf32, #tpu.memory_space<vmem>>, %arg3: memref<1x64xf32, #tpu.memory_space<vmem>>, %arg4: memref<1024x64xbf16, #tpu.memory_space<vmem>>) attributes {dimension_semantics = [], scalar_prefetch = 0 : i64, scratch_operands = 0 : i64, tpu.core_type = #tpu.core_type<tc>} {
    %c0 = arith.constant 0 : index
    %c0_0 = arith.constant 0 : index
    %0 = vector.load %arg0[%c0, %c0_0] : memref<1024x56xbf16, #tpu.memory_space<vmem>>, vector<1024x56xbf16>
    %c0_1 = arith.constant 0 : index
    %c0_2 = arith.constant 0 : index
    %1 = vector.load %arg1[%c0_1, %c0_2] : memref<56x64xbf16, #tpu.memory_space<vmem>>, vector<56x64xbf16>
    %cst = arith.constant dense<0.000000e+00> : vector<1024x64xf32>
    %2 = tpu.matmul %0, %1, %cst {dimension_numbers = #tpu.dot_dimension_numbers<[1], [0], [0], [1], [0, 0, 1, 1], [], []>} : vector<1024x56xbf16>, vector<56x64xbf16>, vector<1024x64xf32> -> vector<1024x64xf32>
    %c0_3 = arith.constant 0 : index
    %c0_4 = arith.constant 0 : index
    %3 = vector.load %arg2[%c0_3, %c0_4] : memref<1x64xf32, #tpu.memory_space<vmem>>, vector<1x64xf32>
    %4 = vector.broadcast %3 : vector<1x64xf32> to vector<1024x64xf32>
    %5 = arith.mulf %2, %4 : vector<1024x64xf32>
    %c0_5 = arith.constant 0 : index
    %c0_6 = arith.constant 0 : index
    %6 = vector.load %arg3[%c0_5, %c0_6] : memref<1x64xf32, #tpu.memory_space<vmem>>, vector<1x64xf32>
    %7 = vector.broadcast %6 : vector<1x64xf32> to vector<1024x64xf32>
    %8 = arith.addf %5, %7 : vector<1024x64xf32>
    %cst_7 = arith.constant 0.000000e+00 : f32
    %9 = vector.broadcast %cst_7 : f32 to vector<1024x64xf32>
    %10 = arith.maximumf %8, %9 : vector<1024x64xf32>
    %11 = arith.truncf %10 : vector<1024x64xf32> to vector<1024x64xbf16>
    %c0_8 = arith.constant 0 : index
    %c0_9 = arith.constant 0 : index
    %12 = vector.load %arg4[%c0_8, %c0_9] : memref<1024x64xbf16, #tpu.memory_space<vmem>>, vector<1024x64xbf16>
    tpu.vector_store %arg4[%c0_8, %c0_9], %11 {strides = array<i32>} : memref<1024x64xbf16, #tpu.memory_space<vmem>>, vector<1024x64xbf16>,
    return
  }
}

</mosaic_0001>

<bundles_post_ra>
// kernel: stem.1
= control target key start
LH: loop header
LB: loop body
LE: loop exit
PB: predicated region body
PF: predicated region fallthrough
CT: control target
= control target key end

     0   :  { %vm688_vm0 = vcmask 1043456   ;;  %s2835_s0 = inlined_call_operand.vmem [shape: bf16[1024,56], index: 0, kind: input, shape index: {}]   ;;  %s2836_s1 = inlined_call_operand.vmem [shape: bf16[56,64], index: 1, kind: input, shape index: {}]   ;;  %s2837_s2 = inlined_call_operand.vmem [shape: f32[1,64], index: 2, kind: input, shape index: {}]   ;;  %s2838_s3 = inlined_call_operand.vmem [shape: f32[1,64], index: 3, kind: input, shape index: {}]   ;;  %s2839_s4 = inlined_call_operand.hbm [shape: bf16[1024,64], index: 4, kind: output, shape index: {}]  }
   0x1   :  { %v153_v0 = vld [vmem:[%s2836_s1 + $0x18] sm:$0xf] }
   0x2   :  { %v487_v1 = vunpack.c.l.b16 %v153_v0 }
   0x4   :  { %v491_v2 = vpack.c.b16 %v487_v1, %v487_v1 }
   0x5   :  { %9 = vsyncpa [#allocation3], 0  ;;  %v2086_v4 = vld [vmem:[%s2836_s1 + $0x10] sm:$0xff]  ;;  %v2085_v5 = vld [vmem:[%s2836_s1 + $0x8] sm:$0xff]  ;;  %vm495_vm1 = vcmask 457728   ;;  %vm1541_vm2 = vcmask 519168  }
   0x6   :  { %v690_v3 = vsel %vm688_vm0, %v491_v2, 0  ;;  %v2084_v6 = vld [vmem:[%s2836_s1] sm:$0xff]  ;;  %v2021_v11 = vld [vmem:[%s2835_s0 + $0x8] sm:$0xff]  ;;  %v2022_v15 = vld [vmem:[%s2835_s0 + $0x10] sm:$0xff]  ;;  %s1676_s25 = sshll.u32 %s2839_s4, 4  ;;  %s2133_s26 = smov 64   ;;  %s1677_s25 = int_to_ptr.hbm [resolvable:$true] %s1676_s25 }
   0x7   :  { %696 = vmatpush.bf16.msra.mxu0 %v690_v3  ;;  %2087 = vmatpush.bf16.msra.mxu1 %v690_v3  ;;  %v2020_v7 = vld [vmem:[%s2835_s0] sm:$0xff]  ;;  %v2037_v12 = vld [vmem:[%s2835_s0 + $0x88] sm:$0xff]  ;;  %v2038_v16 = vld [vmem:[%s2835_s0 + $0x90] sm:$0xff]  ;;  %s2134_s27 = smov 4  }
   0x8   :  { %2088 = vmatpush.bf16.msra.mxu2 %v690_v3  ;;  %2089 = vmatpush.bf16.msra.mxu3 %v690_v3  ;;  %v2036_v8 = vld [vmem:[%s2835_s0 + $0x80] sm:$0xff]  ;;  %v2053_v13 = vld [vmem:[%s2835_s0 + $0x108] sm:$0xff]  ;;  %v2054_v17 = vld [vmem:[%s2835_s0 + $0x110] sm:$0xff] }
   0x9   :  { %v2052_v9 = vld [vmem:[%s2835_s0 + $0x100] sm:$0xff]  ;;  %v2069_v14 = vld [vmem:[%s2835_s0 + $0x188] sm:$0xff]  ;;  %v2070_v18 = vld [vmem:[%s2835_s0 + $0x190] sm:$0xff] }
   0xa   :  { %v2068_v10 = vld [vmem:[%s2835_s0 + $0x180] sm:$0xff]  ;;  %v2023_v19 = vld [vmem:[%s2835_s0 + $0x18] sm:$0xff]  ;;  %v2025_v27 = vld [vmem:[%s2835_s0 + $0x28] sm:$0xff] }
   0xb   :  { %697 = vmatpush.bf16.msra.mxu0 %v2086_v4  ;;  %2090 = vmatpush.bf16.msra.mxu1 %v2086_v4  ;;  %v2039_v20 = vld [vmem:[%s2835_s0 + $0x98] sm:$0xff]  ;;  %v2024_v23 = vld [vmem:[%s2835_s0 + $0x20] sm:$0xff]  ;;  %v2041_v28 = vld [vmem:[%s2835_s0 + $0xa8] sm:$0xff] }
   0xc   :  { %2091 = vmatpush.bf16.msra.mxu2 %v2086_v4  ;;  %2092 = vmatpush.bf16.msra.mxu3 %v2086_v4  ;;  %v2055_v21 = vld [vmem:[%s2835_s0 + $0x118] sm:$0xff]  ;;  %v2040_v24 = vld [vmem:[%s2835_s0 + $0xa0] sm:$0xff]  ;;  %v2057_v29 = vld [vmem:[%s2835_s0 + $0x128] sm:$0xff] }
   0xd   :  { %v2071_v22 = vld [vmem:[%s2835_s0 + $0x198] sm:$0xff]  ;;  %v2056_v25 = vld [vmem:[%s2835_s0 + $0x120] sm:$0xff]  ;;  %v2073_v30 = vld [vmem:[%s2835_s0 + $0x1a8] sm:$0xff] }
   0xe   :  { %v2072_v26 = vld [vmem:[%s2835_s0 + $0x1a0] sm:$0xff]  ;;  %v2026_v31 = vld [vmem:[%s2835_s0 + $0x30] sm:$0xff]  ;;  %v2027_v35 = vld [vmem:[%s2835_s0 + $0x38] sm:$0xff] }
   0xf   :  { %698 = vmatpush.bf16.msra.mxu0 %v2085_v5  ;;  %2093 = vmatpush.bf16.msra.mxu1 %v2085_v5  ;;  %v2042_v32 = vld [vmem:[%s2835_s0 + $0xb0] sm:$0xff]  ;;  %v2043_v36 = vld [vmem:[%s2835_s0 + $0xb8] sm:$0xff]  ;;  %v2303_v39 = vld [vmem:[%s2837_s2] ss:$0 sm:$0xff] }
  0x10   :  { %2094 = vmatpush.bf16.msra.mxu2 %v2085_v5  ;;  %2095 = vmatpush.bf16.msra.mxu3 %v2085_v5  ;;  %v2058_v33 = vld [vmem:[%s2835_s0 + $0x130] sm:$0xff]  ;;  %v2059_v37 = vld [vmem:[%s2835_s0 + $0x138] sm:$0xff]  ;;  %v2308_v40 = vld [vmem:[%s2838_s3] ss:$0 sm:$0xff] }
  0x11   :  { %v2074_v34 = vld [vmem:[%s2835_s0 + $0x1b0] sm:$0xff]  ;;  %v2075_v38 = vld [vmem:[%s2835_s0 + $0x1b8] sm:$0xff]  ;;  %v2028_v41 = vld [vmem:[%s2835_s0 + $0x40] sm:$0xff] }
  0x12   :  { %v2044_v42 = vld [vmem:[%s2835_s0 + $0xc0] sm:$0xff] }
  0x13   :  { %699 = vmatpush.bf16.msra.mxu0 %v2084_v6  ;;  %2096 = vmatpush.bf16.msra.mxu1 %v2084_v6  ;;  %v2060_v45 = vld [vmem:[%s2835_s0 + $0x140] sm:$0xff] }
  0x14   :  { %2097 = vmatpush.bf16.msra.mxu2 %v2084_v6  ;;  %2098 = vmatpush.bf16.msra.mxu3 %v2084_v6  ;;  %v2076_v46 = vld [vmem:[%s2835_s0 + $0x1c0] sm:$0xff] }
  0x16   :  { %1956 = vmatmul.msk.bf16.vlgmr.msra.gmra.mxu0 %vm495_vm1, %v2020_v7  ;;  %1972 = vmatmul.msk.bf16.vlgmr.msra.gmra.mxu1 %vm495_vm1, %v2036_v8 }
  0x17   :  { %1988 = vmatmul.msk.bf16.vlgmr.msra.gmra.mxu2 %vm495_vm1, %v2052_v9  ;;  %2004 = vmatmul.msk.bf16.vlgmr.msra.gmra.mxu3 %vm495_vm1, %v2068_v10 }
  0x26   :  { %1957 = vmatmul.msk.bf16.gmra.mxu0 %vm495_vm1, %v2021_v11  ;;  %1973 = vmatmul.msk.bf16.gmra.mxu1 %vm495_vm1, %v2037_v12 }
  0x27   :  { %1989 = vmatmul.msk.bf16.gmra.mxu2 %vm495_vm1, %v2053_v13  ;;  %2005 = vmatmul.msk.bf16.gmra.mxu3 %vm495_vm1, %v2069_v14  ;;  %v2029_v13 = vld [vmem:[%s2835_s0 + $0x48] sm:$0xff] }
  0x28   :  { %v2045_v14 = vld [vmem:[%s2835_s0 + $0xc8] sm:$0xff] }
  0x36   :  { %1958 = vmatmul.msk.bf16.gmra.mxu0 %vm495_vm1, %v2022_v15  ;;  %1974 = vmatmul.msk.bf16.gmra.mxu1 %vm495_vm1, %v2038_v16 }
  0x37   :  { %1990 = vmatmul.msk.bf16.gmra.mxu2 %vm495_vm1, %v2054_v17  ;;  %2006 = vmatmul.msk.bf16.gmra.mxu3 %vm495_vm1, %v2070_v18 }
  0x46   :  { %1959 = vmatmul.msk.bf16.gmra.mxu0 %vm495_vm1, %v2023_v19  ;;  %1975 = vmatmul.msk.bf16.gmra.mxu1 %vm495_vm1, %v2039_v20  ;;  %v2061_v19 = vld [vmem:[%s2835_s0 + $0x148] sm:$0xff] }
  0x47   :  { %1991 = vmatmul.msk.bf16.gmra.mxu2 %vm495_vm1, %v2055_v21  ;;  %2007 = vmatmul.msk.bf16.gmra.mxu3 %vm495_vm1, %v2071_v22  ;;  %v2077_v20 = vld [vmem:[%s2835_s0 + $0x1c8] sm:$0xff] }
  0x56   :  { %1960 = vmatmul.msk.bf16.gmra.mxu0 %vm495_vm1, %v2024_v23  ;;  %1976 = vmatmul.msk.bf16.gmra.mxu1 %vm495_vm1, %v2040_v24 }
  0x57   :  { %1992 = vmatmul.msk.bf16.gmra.mxu2 %vm495_vm1, %v2056_v25  ;;  %2008 = vmatmul.msk.bf16.gmra.mxu3 %vm495_vm1, %v2072_v26 }
  0x66   :  { %1961 = vmatmul.msk.bf16.gmra.mxu0 %vm495_vm1, %v2025_v27  ;;  %1977 = vmatmul.msk.bf16.gmra.mxu1 %vm495_vm1, %v2041_v28 }
  0x67   :  { %1993 = vmatmul.msk.bf16.gmra.mxu2 %vm495_vm1, %v2057_v29  ;;  %2009 = vmatmul.msk.bf16.gmra.mxu3 %vm495_vm1, %v2073_v30 }
  0x76   :  { %1962 = vmatmul.msk.bf16.gmra.mxu0 %vm495_vm1, %v2026_v31  ;;  %1978 = vmatmul.msk.bf16.gmra.mxu1 %vm495_vm1, %v2042_v32 }
  0x77   :  { %1994 = vmatmul.msk.bf16.gmra.mxu2 %vm495_vm1, %v2058_v33  ;;  %2010 = vmatmul.msk.bf16.gmra.mxu3 %vm495_vm1, %v2074_v34 }
  0x86   :  { %1963 = vmatmul.msk.bf16.gmra.mxu0 %vm495_vm1, %v2027_v35  ;;  %1979 = vmatmul.msk.bf16.gmra.mxu1 %vm495_vm1, %v2043_v36 }
  0x87   :  { %1995 = vmatmul.msk.bf16.gmra.mxu2 %vm495_vm1, %v2059_v37  ;;  %2011 = vmatmul.msk.bf16.gmra.mxu3 %vm495_vm1, %v2075_v38 }
  0x93   :  { %v701_v43 = vpop.f32.mrf.mxu0  ;;  %v781_v44 = vpop.f32.mrf.mxu1 }
  0x94   :  { %v1025_v47 = vmul.f32 %v2303_v39, %v701_v43  ;;  %v1057_v48 = vmul.f32 %v2303_v39, %v781_v44 }
  0x96   :  { %v1157_v49 = vadd.f32 %v2308_v40, %v1025_v47  ;;  %v1189_v50 = vadd.f32 %v2308_v40, %v1057_v48  ;;  %1964 = vmatmul.msk.bf16.gmra.mxu0 %vm495_vm1, %v2028_v41  ;;  %1980 = vmatmul.msk.bf16.gmra.mxu1 %vm495_vm1, %v2044_v42 }
  0x97   :  { %1996 = vmatmul.msk.bf16.gmra.mxu2 %vm495_vm1, %v2060_v45  ;;  %2012 = vmatmul.msk.bf16.gmra.mxu3 %vm495_vm1, %v2076_v46 }
  0x98   :  { %v1285_v51 = vmax.f32 %v1157_v49, 0.0  ;;  %v1317_v52 = vmax.f32 %v1189_v50, 0.0 }
  0x9a   :  { %v1413_v53 = vpack.c.bf16 %v1285_v51, %v1285_v51  ;;  %v1445_v54 = vpack.c.bf16 %v1317_v52, %v1317_v52  ;;  %v861_v55 = vpop.f32.mrf.mxu2  ;;  %v941_v56 = vpop.f32.mrf.mxu3 }
  0x9b   :  { %v1089_v57 = vmul.f32 %v2303_v39, %v861_v55  ;;  %v1121_v58 = vmul.f32 %v2303_v39, %v941_v56  ;;  %v703_v59 = vpop.f32.mrf.mxu0  ;;  %v783_v60 = vpop.f32.mrf.mxu1 }
  0x9c   :  { %1542 = vst.msk [vmem:[#allocation2] sm:$0xf] %vm1541_vm2, %v1413_v53  ;;  %v1026_v61 = vmul.f32 %v2303_v39, %v703_v59  ;;  %v1058_v62 = vmul.f32 %v2303_v39, %v783_v60  ;;  %v2030_v59 = vld [vmem:[%s2835_s0 + $0x50] sm:$0xff] }
  0x9d   :  { %1574 = vst.msk [vmem:[#allocation2 + $0x80] sm:$0xf] %vm1541_vm2, %v1445_v54  ;;  %v1221_v63 = vadd.f32 %v2308_v40, %v1089_v57  ;;  %v1253_v0 = vadd.f32 %v2308_v40, %v1121_v58  ;;  %v2046_v60 = vld [vmem:[%s2835_s0 + $0xd0] sm:$0xff] }
  0x9e   :  { %v1158_v1 = vadd.f32 %v2308_v40, %v1026_v61  ;;  %v1190_v2 = vadd.f32 %v2308_v40, %v1058_v62 }
  0x9f   :  { %v1349_v3 = vmax.f32 %v1221_v63, 0.0  ;;  %v1381_v4 = vmax.f32 %v1253_v0, 0.0 }
  0xa0   :  { %v1286_v5 = vmax.f32 %v1158_v1, 0.0  ;;  %v1318_v6 = vmax.f32 %v1190_v2, 0.0  ;;  %v2062_v1 = vld [vmem:[%s2835_s0 + $0x150] sm:$0xff] }
  0xa1   :  { %v1477_v7 = vpack.c.bf16 %v1349_v3, %v1349_v3  ;;  %v1509_v8 = vpack.c.bf16 %v1381_v4, %v1381_v4  ;;  %v2078_v2 = vld [vmem:[%s2835_s0 + $0x1d0] sm:$0xff] }
  0xa2   :  { %v1414_v9 = vpack.c.bf16 %v1286_v5, %v1286_v5  ;;  %v1446_v10 = vpack.c.bf16 %v1318_v6, %v1318_v6  ;;  %v863_v11 = vpop.f32.mrf.mxu2  ;;  %v943_v12 = vpop.f32.mrf.mxu3 }
  0xa3   :  { %1606 = vst.msk [vmem:[#allocation2 + $0x100] sm:$0xf] %vm1541_vm2, %v1477_v7  ;;  %v1090_v15 = vmul.f32 %v2303_v39, %v863_v11  ;;  %v1122_v16 = vmul.f32 %v2303_v39, %v943_v12  ;;  %v706_v17 = vpop.f32.mrf.mxu0  ;;  %v786_v18 = vpop.f32.mrf.mxu1 }
  0xa4   :  { %1638 = vst.msk [vmem:[#allocation2 + $0x180] sm:$0xf] %vm1541_vm2, %v1509_v8  ;;  %v1027_v21 = vmul.f32 %v2303_v39, %v706_v17  ;;  %v1059_v22 = vmul.f32 %v2303_v39, %v786_v18 }
  0xa5   :  { %1543 = vst.msk [vmem:[#allocation2 + $0x4] sm:$0xf] %vm1541_vm2, %v1414_v9  ;;  %v1222_v23 = vadd.f32 %v2308_v40, %v1090_v15  ;;  %v1254_v24 = vadd.f32 %v2308_v40, %v1122_v16 }
  0xa6   :  { %1575 = vst.msk [vmem:[#allocation2 + $0x84] sm:$0xf] %vm1541_vm2, %v1446_v10  ;;  %v1159_v25 = vadd.f32 %v2308_v40, %v1027_v21  ;;  %v1191_v26 = vadd.f32 %v2308_v40, %v1059_v22  ;;  %1965 = vmatmul.msk.bf16.gmra.mxu0 %vm495_vm1, %v2029_v13  ;;  %1981 = vmatmul.msk.bf16.gmra.mxu1 %vm495_vm1, %v2045_v14 }
  0xa7   :  { %v1350_v27 = vmax.f32 %v1222_v23, 0.0  ;;  %v1382_v28 = vmax.f32 %v1254_v24, 0.0  ;;  %1997 = vmatmul.msk.bf16.gmra.mxu2 %vm495_vm1, %v2061_v19  ;;  %2013 = vmatmul.msk.bf16.gmra.mxu3 %vm495_vm1, %v2077_v20 }
  0xa8   :  { %v1287_v29 = vmax.f32 %v1159_v25, 0.0  ;;  %v1319_v30 = vmax.f32 %v1191_v26, 0.0 }
  0xa9   :  { %v1478_v31 = vpack.c.bf16 %v1350_v27, %v1350_v27  ;;  %v1510_v32 = vpack.c.bf16 %v1382_v28, %v1382_v28 }
  0xaa   :  { %v1415_v33 = vpack.c.bf16 %v1287_v29, %v1287_v29  ;;  %v1447_v34 = vpack.c.bf16 %v1319_v30, %v1319_v30  ;;  %v866_v35 = vpop.f32.mrf.mxu2  ;;  %v946_v36 = vpop.f32.mrf.mxu3 }
  0xab   :  { %1607 = vst.msk [vmem:[#allocation2 + $0x104] sm:$0xf] %vm1541_vm2, %v1478_v31  ;;  %v1091_v37 = vmul.f32 %v2303_v39, %v866_v35  ;;  %v1123_v38 = vmul.f32 %v2303_v39, %v946_v36  ;;  %v708_v41 = vpop.f32.mrf.mxu0  ;;  %v788_v42 = vpop.f32.mrf.mxu1 }
  0xac   :  { %1639 = vst.msk [vmem:[#allocation2 + $0x184] sm:$0xf] %vm1541_vm2, %v1510_v32  ;;  %v1028_v43 = vmul.f32 %v2303_v39, %v708_v41  ;;  %v1060_v44 = vmul.f32 %v2303_v39, %v788_v42  ;;  %v2031_v41 = vld [vmem:[%s2835_s0 + $0x58] sm:$0xff] }
  0xad   :  { %1544 = vst.msk [vmem:[#allocation2 + $0x8] sm:$0xf] %vm1541_vm2, %v1415_v33  ;;  %v1223_v45 = vadd.f32 %v2308_v40, %v1091_v37  ;;  %v1255_v46 = vadd.f32 %v2308_v40, %v1123_v38  ;;  %v2047_v42 = vld [vmem:[%s2835_s0 + $0xd8] sm:$0xff] }
  0xae   :  { %1576 = vst.msk [vmem:[#allocation2 + $0x88] sm:$0xf] %vm1541_vm2, %v1447_v34  ;;  %v1160_v47 = vadd.f32 %v2308_v40, %v1028_v43  ;;  %v1192_v48 = vadd.f32 %v2308_v40, %v1060_v44 }
  0xaf   :  { %v1351_v49 = vmax.f32 %v1223_v45, 0.0  ;;  %v1383_v50 = vmax.f32 %v1255_v46, 0.0 }
  0xb0   :  { %v1288_v51 = vmax.f32 %v1160_v47, 0.0  ;;  %v1320_v52 = vmax.f32 %v1192_v48, 0.0  ;;  %v2063_v47 = vld [vmem:[%s2835_s0 + $0x158] sm:$0xff] }
  0xb1   :  { %v1479_v53 = vpack.c.bf16 %v1351_v49, %v1351_v49  ;;  %v1511_v54 = vpack.c.bf16 %v1383_v50, %v1383_v50  ;;  %v2079_v48 = vld [vmem:[%s2835_s0 + $0x1d8] sm:$0xff] }
  0xb2   :  { %v1416_v55 = vpack.c.bf16 %v1288_v51, %v1288_v51  ;;  %v1448_v56 = vpack.c.bf16 %v1320_v52, %v1320_v52  ;;  %v868_v57 = vpop.f32.mrf.mxu2  ;;  %v948_v58 = vpop.f32.mrf.mxu3 }
  0xb3   :  { %1608 = vst.msk [vmem:[#allocation2 + $0x108] sm:$0xf] %vm1541_vm2, %v1479_v53  ;;  %v1092_v61 = vmul.f32 %v2303_v39, %v868_v57  ;;  %v1124_v62 = vmul.f32 %v2303_v39, %v948_v58  ;;  %v711_v63 = vpop.f32.mrf.mxu0  ;;  %v791_v0 = vpop.f32.mrf.mxu1 }
  0xb4   :  { %1640 = vst.msk [vmem:[#allocation2 + $0x188] sm:$0xf] %vm1541_vm2, %v1511_v54  ;;  %v1029_v3 = vmul.f32 %v2303_v39, %v711_v63  ;;  %v1061_v4 = vmul.f32 %v2303_v39, %v791_v0 }
  0xb5   :  { %1545 = vst.msk [vmem:[#allocation2 + $0xc] sm:$0xf] %vm1541_vm2, %v1416_v55  ;;  %v1224_v5 = vadd.f32 %v2308_v40, %v1092_v61  ;;  %v1256_v6 = vadd.f32 %v2308_v40, %v1124_v62 }
  0xb6   :  { %1577 = vst.msk [vmem:[#allocation2 + $0x8c] sm:$0xf] %vm1541_vm2, %v1448_v56  ;;  %v1161_v7 = vadd.f32 %v2308_v40, %v1029_v3  ;;  %v1193_v8 = vadd.f32 %v2308_v40, %v1061_v4  ;;  %1966 = vmatmul.msk.bf16.gmra.mxu0 %vm495_vm1, %v2030_v59  ;;  %1982 = vmatmul.msk.bf16.gmra.mxu1 %vm495_vm1, %v2046_v60 }
  0xb7   :  { %v1352_v9 = vmax.f32 %v1224_v5, 0.0  ;;  %v1384_v10 = vmax.f32 %v1256_v6, 0.0  ;;  %1998 = vmatmul.msk.bf16.gmra.mxu2 %vm495_vm1, %v2062_v1  ;;  %2014 = vmatmul.msk.bf16.gmra.mxu3 %vm495_vm1, %v2078_v2 }
  0xb8   :  { %v1289_v11 = vmax.f32 %v1161_v7, 0.0  ;;  %v1321_v12 = vmax.f32 %v1193_v8, 0.0 }
  0xb9   :  { %v1480_v13 = vpack.c.bf16 %v1352_v9, %v1352_v9  ;;  %v1512_v14 = vpack.c.bf16 %v1384_v10, %v1384_v10 }
  0xba   :  { %v1417_v15 = vpack.c.bf16 %v1289_v11, %v1289_v11  ;;  %v1449_v16 = vpack.c.bf16 %v1321_v12, %v1321_v12  ;;  %v871_v17 = vpop.f32.mrf.mxu2  ;;  %v951_v18 = vpop.f32.mrf.mxu3 }
  0xbb   :  { %1609 = vst.msk [vmem:[#allocation2 + $0x10c] sm:$0xf] %vm1541_vm2, %v1480_v13  ;;  %v1093_v19 = vmul.f32 %v2303_v39, %v871_v17  ;;  %v1125_v20 = vmul.f32 %v2303_v39, %v951_v18  ;;  %v713_v21 = vpop.f32.mrf.mxu0  ;;  %v793_v22 = vpop.f32.mrf.mxu1 }
  0xbc   :  { %1641 = vst.msk [vmem:[#allocation2 + $0x18c] sm:$0xf] %vm1541_vm2, %v1512_v14  ;;  %v1030_v23 = vmul.f32 %v2303_v39, %v713_v21  ;;  %v1062_v24 = vmul.f32 %v2303_v39, %v793_v22  ;;  %v2032_v21 = vld [vmem:[%s2835_s0 + $0x60] sm:$0xff] }
  0xbd   :  { %1546 = vst.msk [vmem:[#allocation2 + $0x10] sm:$0xf] %vm1541_vm2, %v1417_v15  ;;  %v1225_v25 = vadd.f32 %v2308_v40, %v1093_v19  ;;  %v1257_v26 = vadd.f32 %v2308_v40, %v1125_v20  ;;  %v2048_v22 = vld [vmem:[%s2835_s0 + $0xe0] sm:$0xff] }
  0xbe   :  { %1578 = vst.msk [vmem:[#allocation2 + $0x90] sm:$0xf] %vm1541_vm2, %v1449_v16  ;;  %v1162_v27 = vadd.f32 %v2308_v40, %v1030_v23  ;;  %v1194_v28 = vadd.f32 %v2308_v40, %v1062_v24 }
  0xbf   :  { %v1353_v29 = vmax.f32 %v1225_v25, 0.0  ;;  %v1385_v30 = vmax.f32 %v1257_v26, 0.0 }
  0xc0   :  { %v1290_v31 = vmax.f32 %v1162_v27, 0.0  ;;  %v1322_v32 = vmax.f32 %v1194_v28, 0.0  ;;  %v2064_v27 = vld [vmem:[%s2835_s0 + $0x160] sm:$0xff] }
  0xc1   :  { %v1481_v33 = vpack.c.bf16 %v1353_v29, %v1353_v29  ;;  %v1513_v34 = vpack.c.bf16 %v1385_v30, %v1385_v30  ;;  %v2080_v28 = vld [vmem:[%s2835_s0 + $0x1e0] sm:$0xff] }
  0xc2   :  { %v1418_v35 = vpack.c.bf16 %v1290_v31, %v1290_v31  ;;  %v1450_v36 = vpack.c.bf16 %v1322_v32, %v1322_v32  ;;  %v873_v37 = vpop.f32.mrf.mxu2  ;;  %v953_v38 = vpop.f32.mrf.mxu3 }
  0xc3   :  { %1610 = vst.msk [vmem:[#allocation2 + $0x110] sm:$0xf] %vm1541_vm2, %v1481_v33  ;;  %v1094_v43 = vmul.f32 %v2303_v39, %v873_v37  ;;  %v1126_v44 = vmul.f32 %v2303_v39, %v953_v38  ;;  %v716_v45 = vpop.f32.mrf.mxu0  ;;  %v796_v46 = vpop.f32.mrf.mxu1 }
  0xc4   :  { %1642 = vst.msk [vmem:[#allocation2 + $0x190] sm:$0xf] %vm1541_vm2, %v1513_v34  ;;  %v1031_v49 = vmul.f32 %v2303_v39, %v716_v45  ;;  %v1063_v50 = vmul.f32 %v2303_v39, %v796_v46 }
  0xc5   :  { %1547 = vst.msk [vmem:[#allocation2 + $0x14] sm:$0xf] %vm1541_vm2, %v1418_v35  ;;  %v1226_v51 = vadd.f32 %v2308_v40, %v1094_v43  ;;  %v1258_v52 = vadd.f32 %v2308_v40, %v1126_v44 }
  0xc6   :  { %1579 = vst.msk [vmem:[#allocation2 + $0x94] sm:$0xf] %vm1541_vm2, %v1450_v36  ;;  %v1163_v53 = vadd.f32 %v2308_v40, %v1031_v49  ;;  %v1195_v54 = vadd.f32 %v2308_v40, %v1063_v50  ;;  %1967 = vmatmul.msk.bf16.gmra.mxu0 %vm495_vm1, %v2031_v41  ;;  %1983 = vmatmul.msk.bf16.gmra.mxu1 %vm495_vm1, %v2047_v42 }
  0xc7   :  { %v1354_v55 = vmax.f32 %v1226_v51, 0.0  ;;  %v1386_v56 = vmax.f32 %v1258_v52, 0.0  ;;  %1999 = vmatmul.msk.bf16.gmra.mxu2 %vm495_vm1, %v2063_v47  ;;  %2015 = vmatmul.msk.bf16.gmra.mxu3 %vm495_vm1, %v2079_v48 }
  0xc8   :  { %v1291_v57 = vmax.f32 %v1163_v53, 0.0  ;;  %v1323_v58 = vmax.f32 %v1195_v54, 0.0 }
  0xc9   :  { %v1482_v59 = vpack.c.bf16 %v1354_v55, %v1354_v55  ;;  %v1514_v60 = vpack.c.bf16 %v1386_v56, %v1386_v56 }
  0xca   :  { %v1419_v61 = vpack.c.bf16 %v1291_v57, %v1291_v57  ;;  %v1451_v62 = vpack.c.bf16 %v1323_v58, %v1323_v58  ;;  %v876_v63 = vpop.f32.mrf.mxu2  ;;  %v956_v0 = vpop.f32.mrf.mxu3 }
  0xcb   :  { %1611 = vst.msk [vmem:[#allocation2 + $0x114] sm:$0xf] %vm1541_vm2, %v1482_v59  ;;  %v1095_v1 = vmul.f32 %v2303_v39, %v876_v63  ;;  %v1127_v2 = vmul.f32 %v2303_v39, %v956_v0  ;;  %v718_v3 = vpop.f32.mrf.mxu0  ;;  %v798_v4 = vpop.f32.mrf.mxu1 }
  0xcc   :  { %1643 = vst.msk [vmem:[#allocation2 + $0x194] sm:$0xf] %vm1541_vm2, %v1514_v60  ;;  %v1032_v5 = vmul.f32 %v2303_v39, %v718_v3  ;;  %v1064_v6 = vmul.f32 %v2303_v39, %v798_v4  ;;  %v2033_v3 = vld [vmem:[%s2835_s0 + $0x68] sm:$0xff] }
  0xcd   :  { %1548 = vst.msk [vmem:[#allocation2 + $0x18] sm:$0xf] %vm1541_vm2, %v1419_v61  ;;  %v1227_v7 = vadd.f32 %v2308_v40, %v1095_v1  ;;  %v1259_v8 = vadd.f32 %v2308_v40, %v1127_v2  ;;  %v2049_v4 = vld [vmem:[%s2835_s0 + $0xe8] sm:$0xff] }
  0xce   :  { %1580 = vst.msk [vmem:[#allocation2 + $0x98] sm:$0xf] %vm1541_vm2, %v1451_v62  ;;  %v1164_v9 = vadd.f32 %v2308_v40, %v1032_v5  ;;  %v1196_v10 = vadd.f32 %v2308_v40, %v1064_v6 }
  0xcf   :  { %v1355_v11 = vmax.f32 %v1227_v7, 0.0  ;;  %v1387_v12 = vmax.f32 %v1259_v8, 0.0 }
  0xd0   :  { %v1292_v13 = vmax.f32 %v1164_v9, 0.0  ;;  %v1324_v14 = vmax.f32 %v1196_v10, 0.0  ;;  %v2065_v9 = vld [vmem:[%s2835_s0 + $0x168] sm:$0xff] }
  0xd1   :  { %v1483_v15 = vpack.c.bf16 %v1355_v11, %v1355_v11  ;;  %v1515_v16 = vpack.c.bf16 %v1387_v12, %v1387_v12  ;;  %v2081_v10 = vld [vmem:[%s2835_s0 + $0x1e8] sm:$0xff] }
  0xd2   :  { %v1420_v17 = vpack.c.bf16 %v1292_v13, %v1292_v13  ;;  %v1452_v18 = vpack.c.bf16 %v1324_v14, %v1324_v14  ;;  %v878_v19 = vpop.f32.mrf.mxu2  ;;  %v958_v20 = vpop.f32.mrf.mxu3 }
  0xd3   :  { %1612 = vst.msk [vmem:[#allocation2 + $0x118] sm:$0xf] %vm1541_vm2, %v1483_v15  ;;  %v1096_v23 = vmul.f32 %v2303_v39, %v878_v19  ;;  %v1128_v24 = vmul.f32 %v2303_v39, %v958_v20  ;;  %v721_v25 = vpop.f32.mrf.mxu0  ;;  %v801_v26 = vpop.f32.mrf.mxu1 }
  0xd4   :  { %1644 = vst.msk [vmem:[#allocation2 + $0x198] sm:$0xf] %vm1541_vm2, %v1515_v16  ;;  %v1033_v29 = vmul.f32 %v2303_v39, %v721_v25  ;;  %v1065_v30 = vmul.f32 %v2303_v39, %v801_v26 }
  0xd5   :  { %1549 = vst.msk [vmem:[#allocation2 + $0x1c] sm:$0xf] %vm1541_vm2, %v1420_v17  ;;  %v1228_v31 = vadd.f32 %v2308_v40, %v1096_v23  ;;  %v1260_v32 = vadd.f32 %v2308_v40, %v1128_v24 }
  0xd6   :  { %1581 = vst.msk [vmem:[#allocation2 + $0x9c] sm:$0xf] %vm1541_vm2, %v1452_v18  ;;  %v1165_v33 = vadd.f32 %v2308_v40, %v1033_v29  ;;  %v1197_v34 = vadd.f32 %v2308_v40, %v1065_v30  ;;  %1968 = vmatmul.msk.bf16.gmra.mxu0 %vm495_vm1, %v2032_v21  ;;  %1984 = vmatmul.msk.bf16.gmra.mxu1 %vm495_vm1, %v2048_v22 }
  0xd7   :  { %v1356_v35 = vmax.f32 %v1228_v31, 0.0  ;;  %v1388_v36 = vmax.f32 %v1260_v32, 0.0  ;;  %2000 = vmatmul.msk.bf16.gmra.mxu2 %vm495_vm1, %v2064_v27  ;;  %2016 = vmatmul.msk.bf16.gmra.mxu3 %vm495_vm1, %v2080_v28 }
  0xd8   :  { %v1293_v37 = vmax.f32 %v1165_v33, 0.0  ;;  %v1325_v38 = vmax.f32 %v1197_v34, 0.0 }
  0xd9   :  { %v1484_v41 = vpack.c.bf16 %v1356_v35, %v1356_v35  ;;  %v1516_v42 = vpack.c.bf16 %v1388_v36, %v1388_v36 }
  0xda   :  { %v1421_v43 = vpack.c.bf16 %v1293_v37, %v1293_v37  ;;  %v1453_v44 = vpack.c.bf16 %v1325_v38, %v1325_v38  ;;  %v881_v45 = vpop.f32.mrf.mxu2  ;;  %v961_v46 = vpop.f32.mrf.mxu3 }
  0xdb   :  { %1613 = vst.msk [vmem:[#allocation2 + $0x11c] sm:$0xf] %vm1541_vm2, %v1484_v41  ;;  %v1097_v47 = vmul.f32 %v2303_v39, %v881_v45  ;;  %v1129_v48 = vmul.f32 %v2303_v39, %v961_v46  ;;  %v723_v49 = vpop.f32.mrf.mxu0  ;;  %v803_v50 = vpop.f32.mrf.mxu1 }
  0xdc   :  { %1645 = vst.msk [vmem:[#allocation2 + $0x19c] sm:$0xf] %vm1541_vm2, %v1516_v42  ;;  %v1034_v51 = vmul.f32 %v2303_v39, %v723_v49  ;;  %v1066_v52 = vmul.f32 %v2303_v39, %v803_v50  ;;  %v2034_v49 = vld [vmem:[%s2835_s0 + $0x70] sm:$0xff] }
  0xdd   :  { %1550 = vst.msk [vmem:[#allocation2 + $0x20] sm:$0xf] %vm1541_vm2, %v1421_v43  ;;  %v1229_v53 = vadd.f32 %v2308_v40, %v1097_v47  ;;  %v1261_v54 = vadd.f32 %v2308_v40, %v1129_v48  ;;  %v2050_v50 = vld [vmem:[%s2835_s0 + $0xf0] sm:$0xff] }
  0xde   :  { %1582 = vst.msk [vmem:[#allocation2 + $0xa0] sm:$0xf] %vm1541_vm2, %v1453_v44  ;;  %v1166_v55 = vadd.f32 %v2308_v40, %v1034_v51  ;;  %v1198_v56 = vadd.f32 %v2308_v40, %v1066_v52 }
  0xdf   :  { %v1357_v57 = vmax.f32 %v1229_v53, 0.0  ;;  %v1389_v58 = vmax.f32 %v1261_v54, 0.0 }
  0xe0   :  { %v1294_v59 = vmax.f32 %v1166_v55, 0.0  ;;  %v1326_v60 = vmax.f32 %v1198_v56, 0.0  ;;  %v2066_v55 = vld [vmem:[%s2835_s0 + $0x170] sm:$0xff] }
  0xe1   :  { %v1485_v61 = vpack.c.bf16 %v1357_v57, %v1357_v57  ;;  %v1517_v62 = vpack.c.bf16 %v1389_v58, %v1389_v58  ;;  %v2082_v56 = vld [vmem:[%s2835_s0 + $0x1f0] sm:$0xff] }
  0xe2   :  { %v1422_v63 = vpack.c.bf16 %v1294_v59, %v1294_v59  ;;  %v1454_v0 = vpack.c.bf16 %v1326_v60, %v1326_v60  ;;  %v883_v1 = vpop.f32.mrf.mxu2  ;;  %v963_v2 = vpop.f32.mrf.mxu3 }
  0xe3   :  { %1614 = vst.msk [vmem:[#allocation2 + $0x120] sm:$0xf] %vm1541_vm2, %v1485_v61  ;;  %v1098_v5 = vmul.f32 %v2303_v39, %v883_v1  ;;  %v1130_v6 = vmul.f32 %v2303_v39, %v963_v2  ;;  %v726_v7 = vpop.f32.mrf.mxu0  ;;  %v806_v8 = vpop.f32.mrf.mxu1 }
  0xe4   :  { %1646 = vst.msk [vmem:[#allocation2 + $0x1a0] sm:$0xf] %vm1541_vm2, %v1517_v62  ;;  %v1035_v11 = vmul.f32 %v2303_v39, %v726_v7  ;;  %v1067_v12 = vmul.f32 %v2303_v39, %v806_v8 }
  0xe5   :  { %1551 = vst.msk [vmem:[#allocation2 + $0x24] sm:$0xf] %vm1541_vm2, %v1422_v63  ;;  %v1230_v13 = vadd.f32 %v2308_v40, %v1098_v5  ;;  %v1262_v14 = vadd.f32 %v2308_v40, %v1130_v6 }
  0xe6   :  { %1583 = vst.msk [vmem:[#allocation2 + $0xa4] sm:$0xf] %vm1541_vm2, %v1454_v0  ;;  %v1167_v15 = vadd.f32 %v2308_v40, %v1035_v11  ;;  %v1199_v16 = vadd.f32 %v2308_v40, %v1067_v12  ;;  %1969 = vmatmul.msk.bf16.gmra.mxu0 %vm495_vm1, %v2033_v3  ;;  %1985 = vmatmul.msk.bf16.gmra.mxu1 %vm495_vm1, %v2049_v4 }
  0xe7   :  { %v1358_v17 = vmax.f32 %v1230_v13, 0.0  ;;  %v1390_v18 = vmax.f32 %v1262_v14, 0.0  ;;  %2001 = vmatmul.msk.bf16.gmra.mxu2 %vm495_vm1, %v2065_v9  ;;  %2017 = vmatmul.msk.bf16.gmra.mxu3 %vm495_vm1, %v2081_v10 }
  0xe8   :  { %v1295_v19 = vmax.f32 %v1167_v15, 0.0  ;;  %v1327_v20 = vmax.f32 %v1199_v16, 0.0 }
  0xe9   :  { %v1486_v21 = vpack.c.bf16 %v1358_v17, %v1358_v17  ;;  %v1518_v22 = vpack.c.bf16 %v1390_v18, %v1390_v18 }
  0xea   :  { %v1423_v23 = vpack.c.bf16 %v1295_v19, %v1295_v19  ;;  %v1455_v24 = vpack.c.bf16 %v1327_v20, %v1327_v20  ;;  %v886_v25 = vpop.f32.mrf.mxu2  ;;  %v966_v26 = vpop.f32.mrf.mxu3 }
  0xeb   :  { %1615 = vst.msk [vmem:[#allocation2 + $0x124] sm:$0xf] %vm1541_vm2, %v1486_v21  ;;  %v1099_v27 = vmul.f32 %v2303_v39, %v886_v25  ;;  %v1131_v28 = vmul.f32 %v2303_v39, %v966_v26  ;;  %v728_v29 = vpop.f32.mrf.mxu0  ;;  %v808_v30 = vpop.f32.mrf.mxu1 }
  0xec   :  { %1647 = vst.msk [vmem:[#allocation2 + $0x1a4] sm:$0xf] %vm1541_vm2, %v1518_v22  ;;  %v1036_v31 = vmul.f32 %v2303_v39, %v728_v29  ;;  %v1068_v32 = vmul.f32 %v2303_v39, %v808_v30  ;;  %v2035_v29 = vld [vmem:[%s2835_s0 + $0x78] sm:$0xff] }
  0xed   :  { %1552 = vst.msk [vmem:[#allocation2 + $0x28] sm:$0xf] %vm1541_vm2, %v1423_v23  ;;  %v1231_v33 = vadd.f32 %v2308_v40, %v1099_v27  ;;  %v1263_v34 = vadd.f32 %v2308_v40, %v1131_v28  ;;  %v2051_v30 = vld [vmem:[%s2835_s0 + $0xf8] sm:$0xff] }
  0xee   :  { %1584 = vst.msk [vmem:[#allocation2 + $0xa8] sm:$0xf] %vm1541_vm2, %v1455_v24  ;;  %v1168_v35 = vadd.f32 %v2308_v40, %v1036_v31  ;;  %v1200_v36 = vadd.f32 %v2308_v40, %v1068_v32 }
  0xef   :  { %v1359_v37 = vmax.f32 %v1231_v33, 0.0  ;;  %v1391_v38 = vmax.f32 %v1263_v34, 0.0 }
  0xf0   :  { %v1296_v41 = vmax.f32 %v1168_v35, 0.0  ;;  %v1328_v42 = vmax.f32 %v1200_v36, 0.0  ;;  %v2067_v35 = vld [vmem:[%s2835_s0 + $0x178] sm:$0xff] }
  0xf1   :  { %v1487_v43 = vpack.c.bf16 %v1359_v37, %v1359_v37  ;;  %v1519_v44 = vpack.c.bf16 %v1391_v38, %v1391_v38  ;;  %v2083_v36 = vld [vmem:[%s2835_s0 + $0x1f8] sm:$0xff] }
  0xf2   :  { %v1424_v45 = vpack.c.bf16 %v1296_v41, %v1296_v41  ;;  %v1456_v46 = vpack.c.bf16 %v1328_v42, %v1328_v42  ;;  %v888_v47 = vpop.f32.mrf.mxu2  ;;  %v968_v48 = vpop.f32.mrf.mxu3 }
  0xf3   :  { %1616 = vst.msk [vmem:[#allocation2 + $0x128] sm:$0xf] %vm1541_vm2, %v1487_v43  ;;  %v1100_v51 = vmul.f32 %v2303_v39, %v888_v47  ;;  %v1132_v52 = vmul.f32 %v2303_v39, %v968_v48  ;;  %v731_v53 = vpop.f32.mrf.mxu0  ;;  %v811_v54 = vpop.f32.mrf.mxu1 }
  0xf4   :  { %1648 = vst.msk [vmem:[#allocation2 + $0x1a8] sm:$0xf] %vm1541_vm2, %v1519_v44  ;;  %v1037_v57 = vmul.f32 %v2303_v39, %v731_v53  ;;  %v1069_v58 = vmul.f32 %v2303_v39, %v811_v54 }
  0xf5   :  { %1553 = vst.msk [vmem:[#allocation2 + $0x2c] sm:$0xf] %vm1541_vm2, %v1424_v45  ;;  %v1232_v59 = vadd.f32 %v2308_v40, %v1100_v51  ;;  %v1264_v60 = vadd.f32 %v2308_v40, %v1132_v52 }
  0xf6   :  { %1585 = vst.msk [vmem:[#allocation2 + $0xac] sm:$0xf] %vm1541_vm2, %v1456_v46  ;;  %v1169_v61 = vadd.f32 %v2308_v40, %v1037_v57  ;;  %v1201_v62 = vadd.f32 %v2308_v40, %v1069_v58  ;;  %1970 = vmatmul.msk.bf16.gmra.mxu0 %vm495_vm1, %v2034_v49  ;;  %1986 = vmatmul.msk.bf16.gmra.mxu1 %vm495_vm1, %v2050_v50 }
  0xf7   :  { %v1360_v63 = vmax.f32 %v1232_v59, 0.0  ;;  %v1392_v0 = vmax.f32 %v1264_v60, 0.0  ;;  %2002 = vmatmul.msk.bf16.gmra.mxu2 %vm495_vm1, %v2066_v55  ;;  %2018 = vmatmul.msk.bf16.gmra.mxu3 %vm495_vm1, %v2082_v56 }
  0xf8   :  { %v1297_v1 = vmax.f32 %v1169_v61, 0.0  ;;  %v1329_v2 = vmax.f32 %v1201_v62, 0.0 }
  0xf9   :  { %v1488_v3 = vpack.c.bf16 %v1360_v63, %v1360_v63  ;;  %v1520_v4 = vpack.c.bf16 %v1392_v0, %v1392_v0 }
  0xfa   :  { %v1425_v5 = vpack.c.bf16 %v1297_v1, %v1297_v1  ;;  %v1457_v6 = vpack.c.bf16 %v1329_v2, %v1329_v2  ;;  %v891_v7 = vpop.f32.mrf.mxu2  ;;  %v971_v8 = vpop.f32.mrf.mxu3 }
  0xfb   :  { %1617 = vst.msk [vmem:[#allocation2 + $0x12c] sm:$0xf] %vm1541_vm2, %v1488_v3  ;;  %v1101_v9 = vmul.f32 %v2303_v39, %v891_v7  ;;  %v1133_v10 = vmul.f32 %v2303_v39, %v971_v8  ;;  %v733_v11 = vpop.f32.mrf.mxu0  ;;  %v813_v12 = vpop.f32.mrf.mxu1 }
  0xfc   :  { %1649 = vst.msk [vmem:[#allocation2 + $0x1ac] sm:$0xf] %vm1541_vm2, %v1520_v4  ;;  %v1038_v13 = vmul.f32 %v2303_v39, %v733_v11  ;;  %v1070_v14 = vmul.f32 %v2303_v39, %v813_v12 }
  0xfd   :  { %1554 = vst.msk [vmem:[#allocation2 + $0x30] sm:$0xf] %vm1541_vm2, %v1425_v5  ;;  %v1233_v15 = vadd.f32 %v2308_v40, %v1101_v9  ;;  %v1265_v16 = vadd.f32 %v2308_v40, %v1133_v10 }
  0xfe   :  { %1586 = vst.msk [vmem:[#allocation2 + $0xb0] sm:$0xf] %vm1541_vm2, %v1457_v6  ;;  %v1170_v17 = vadd.f32 %v2308_v40, %v1038_v13  ;;  %v1202_v18 = vadd.f32 %v2308_v40, %v1070_v14 }
  0xff   :  { %v1361_v19 = vmax.f32 %v1233_v15, 0.0  ;;  %v1393_v20 = vmax.f32 %v1265_v16, 0.0 }
 0x100   :  { %v1298_v21 = vmax.f32 %v1170_v17, 0.0  ;;  %v1330_v22 = vmax.f32 %v1202_v18, 0.0 }
 0x101   :  { %v1489_v23 = vpack.c.bf16 %v1361_v19, %v1361_v19  ;;  %v1521_v24 = vpack.c.bf16 %v1393_v20, %v1393_v20 }
 0x102   :  { %v1426_v25 = vpack.c.bf16 %v1298_v21, %v1298_v21  ;;  %v1458_v26 = vpack.c.bf16 %v1330_v22, %v1330_v22  ;;  %v893_v27 = vpop.f32.mrf.mxu2  ;;  %v973_v28 = vpop.f32.mrf.mxu3 }
 0x103   :  { %1618 = vst.msk [vmem:[#allocation2 + $0x130] sm:$0xf] %vm1541_vm2, %v1489_v23  ;;  %v1102_v31 = vmul.f32 %v2303_v39, %v893_v27  ;;  %v1134_v32 = vmul.f32 %v2303_v39, %v973_v28  ;;  %v736_v33 = vpop.f32.mrf.mxu0  ;;  %v816_v34 = vpop.f32.mrf.mxu1 }
 0x104   :  { %1650 = vst.msk [vmem:[#allocation2 + $0x1b0] sm:$0xf] %vm1541_vm2, %v1521_v24  ;;  %v1039_v37 = vmul.f32 %v2303_v39, %v736_v33  ;;  %v1071_v38 = vmul.f32 %v2303_v39, %v816_v34 }
 0x105   :  { %1555 = vst.msk [vmem:[#allocation2 + $0x34] sm:$0xf] %vm1541_vm2, %v1426_v25  ;;  %v1234_v41 = vadd.f32 %v2308_v40, %v1102_v31  ;;  %v1266_v42 = vadd.f32 %v2308_v40, %v1134_v32 }
 0x106   :  { %1587 = vst.msk [vmem:[#allocation2 + $0xb4] sm:$0xf] %vm1541_vm2, %v1458_v26  ;;  %v1171_v43 = vadd.f32 %v2308_v40, %v1039_v37  ;;  %v1203_v44 = vadd.f32 %v2308_v40, %v1071_v38  ;;  %1971 = vmatmul.msk.bf16.gmra.mxu0 %vm495_vm1, %v2035_v29  ;;  %1987 = vmatmul.msk.bf16.gmra.mxu1 %vm495_vm1, %v2051_v30 }
 0x107   :  { %v1362_v45 = vmax.f32 %v1234_v41, 0.0  ;;  %v1394_v46 = vmax.f32 %v1266_v42, 0.0  ;;  %2003 = vmatmul.msk.bf16.gmra.mxu2 %vm495_vm1, %v2067_v35  ;;  %2019 = vmatmul.msk.bf16.gmra.mxu3 %vm495_vm1, %v2083_v36 }
 0x108   :  { %v1299_v47 = vmax.f32 %v1171_v43, 0.0  ;;  %v1331_v48 = vmax.f32 %v1203_v44, 0.0 }
 0x109   :  { %v1490_v49 = vpack.c.bf16 %v1362_v45, %v1362_v45  ;;  %v1522_v50 = vpack.c.bf16 %v1394_v46, %v1394_v46 }
 0x10a   :  { %v1427_v51 = vpack.c.bf16 %v1299_v47, %v1299_v47  ;;  %v1459_v52 = vpack.c.bf16 %v1331_v48, %v1331_v48  ;;  %v896_v53 = vpop.f32.mrf.mxu2  ;;  %v976_v54 = vpop.f32.mrf.mxu3 }
 0x10b   :  { %1619 = vst.msk [vmem:[#allocation2 + $0x134] sm:$0xf] %vm1541_vm2, %v1490_v49  ;;  %v1103_v55 = vmul.f32 %v2303_v39, %v896_v53  ;;  %v1135_v56 = vmul.f32 %v2303_v39, %v976_v54  ;;  %v738_v57 = vpop.f32.mrf.mxu0  ;;  %v818_v58 = vpop.f32.mrf.mxu1 }
 0x10c   :  { %1651 = vst.msk [vmem:[#allocation2 + $0x1b4] sm:$0xf] %vm1541_vm2, %v1522_v50  ;;  %v1040_v59 = vmul.f32 %v2303_v39, %v738_v57  ;;  %v1072_v60 = vmul.f32 %v2303_v39, %v818_v58 }
 0x10d   :  { %1556 = vst.msk [vmem:[#allocation2 + $0x38] sm:$0xf] %vm1541_vm2, %v1427_v51  ;;  %v1235_v61 = vadd.f32 %v2308_v40, %v1103_v55  ;;  %v1267_v62 = vadd.f32 %v2308_v40, %v1135_v56 }
 0x10e   :  { %1588 = vst.msk [vmem:[#allocation2 + $0xb8] sm:$0xf] %vm1541_vm2, %v1459_v52  ;;  %v1172_v63 = vadd.f32 %v2308_v40, %v1040_v59  ;;  %v1204_v0 = vadd.f32 %v2308_v40, %v1072_v60 }
 0x10f   :  { %v1363_v1 = vmax.f32 %v1235_v61, 0.0  ;;  %v1395_v2 = vmax.f32 %v1267_v62, 0.0 }
 0x110   :  { %v1300_v3 = vmax.f32 %v1172_v63, 0.0  ;;  %v1332_v4 = vmax.f32 %v1204_v0, 0.0 }
 0x111   :  { %v1491_v5 = vpack.c.bf16 %v1363_v1, %v1363_v1  ;;  %v1523_v6 = vpack.c.bf16 %v1395_v2, %v1395_v2 }
 0x112   :  { %v1428_v7 = vpack.c.bf16 %v1300_v3, %v1300_v3  ;;  %v1460_v8 = vpack.c.bf16 %v1332_v4, %v1332_v4  ;;  %v898_v9 = vpop.f32.mrf.mxu2  ;;  %v978_v10 = vpop.f32.mrf.mxu3 }
 0x113   :  { %1620 = vst.msk [vmem:[#allocation2 + $0x138] sm:$0xf] %vm1541_vm2, %v1491_v5  ;;  %v1104_v11 = vmul.f32 %v2303_v39, %v898_v9  ;;  %v1136_v12 = vmul.f32 %v2303_v39, %v978_v10  ;;  %v741_v13 = vpop.f32.mrf.mxu0  ;;  %v821_v14 = vpop.f32.mrf.mxu1 }
 0x114   :  { %1652 = vst.msk [vmem:[#allocation2 + $0x1b8] sm:$0xf] %vm1541_vm2, %v1523_v6  ;;  %v1041_v15 = vmul.f32 %v2303_v39, %v741_v13  ;;  %v1073_v16 = vmul.f32 %v2303_v39, %v821_v14 }
 0x115   :  { %1557 = vst.msk [vmem:[#allocation2 + $0x3c] sm:$0xf] %vm1541_vm2, %v1428_v7  ;;  %v1236_v17 = vadd.f32 %v2308_v40, %v1104_v11  ;;  %v1268_v18 = vadd.f32 %v2308_v40, %v1136_v12 }
 0x116   :  { %1589 = vst.msk [vmem:[#allocation2 + $0xbc] sm:$0xf] %vm1541_vm2, %v1460_v8  ;;  %v1173_v19 = vadd.f32 %v2308_v40, %v1041_v15  ;;  %v1205_v20 = vadd.f32 %v2308_v40, %v1073_v16  ;;  %v2671_v15 = vld [vmem:[%s2838_s3] ss:$0 sm:$0xff] }
 0x117   :  { %v1364_v21 = vmax.f32 %v1236_v17, 0.0  ;;  %v1396_v22 = vmax.f32 %v1268_v18, 0.0 }
 0x118   :  { %v1301_v23 = vmax.f32 %v1173_v19, 0.0  ;;  %v1333_v24 = vmax.f32 %v1205_v20, 0.0 }
 0x119   :  { %v1492_v25 = vpack.c.bf16 %v1364_v21, %v1364_v21  ;;  %v1524_v26 = vpack.c.bf16 %v1396_v22, %v1396_v22 }
 0x11a   :  { %v1429_v27 = vpack.c.bf16 %v1301_v23, %v1301_v23  ;;  %v1461_v28 = vpack.c.bf16 %v1333_v24, %v1333_v24  ;;  %v901_v29 = vpop.f32.mrf.mxu2  ;;  %v981_v30 = vpop.f32.mrf.mxu3 }
 0x11b   :  { %1621 = vst.msk [vmem:[#allocation2 + $0x13c] sm:$0xf] %vm1541_vm2, %v1492_v25  ;;  %v1105_v31 = vmul.f32 %v2303_v39, %v901_v29  ;;  %v1137_v32 = vmul.f32 %v2303_v39, %v981_v30  ;;  %v743_v33 = vpop.f32.mrf.mxu0  ;;  %v823_v34 = vpop.f32.mrf.mxu1 }
 0x11c   :  { %1653 = vst.msk [vmem:[#allocation2 + $0x1bc] sm:$0xf] %vm1541_vm2, %v1524_v26  ;;  %v1042_v35 = vmul.f32 %v2303_v39, %v743_v33  ;;  %v1074_v36 = vmul.f32 %v2303_v39, %v823_v34 }
 0x11d   :  { %1558 = vst.msk [vmem:[#allocation2 + $0x40] sm:$0xf] %vm1541_vm2, %v1429_v27  ;;  %v1237_v37 = vadd.f32 %v2308_v40, %v1105_v31  ;;  %v1269_v38 = vadd.f32 %v2308_v40, %v1137_v32 }
 0x11e   :  { %1590 = vst.msk [vmem:[#allocation2 + $0xc0] sm:$0xf] %vm1541_vm2, %v1461_v28  ;;  %v1174_v41 = vadd.f32 %v2308_v40, %v1042_v35  ;;  %v1206_v42 = vadd.f32 %v2308_v40, %v1074_v36 }
 0x11f   :  { %v1365_v43 = vmax.f32 %v1237_v37, 0.0  ;;  %v1397_v44 = vmax.f32 %v1269_v38, 0.0 }
 0x120   :  { %v1302_v45 = vmax.f32 %v1174_v41, 0.0  ;;  %v1334_v46 = vmax.f32 %v1206_v42, 0.0 }
 0x121   :  { %v1493_v47 = vpack.c.bf16 %v1365_v43, %v1365_v43  ;;  %v1525_v48 = vpack.c.bf16 %v1397_v44, %v1397_v44 }
 0x122   :  { %v1430_v49 = vpack.c.bf16 %v1302_v45, %v1302_v45  ;;  %v1462_v50 = vpack.c.bf16 %v1334_v46, %v1334_v46  ;;  %v903_v51 = vpop.f32.mrf.mxu2  ;;  %v983_v52 = vpop.f32.mrf.mxu3 }
 0x123   :  { %1622 = vst.msk [vmem:[#allocation2 + $0x140] sm:$0xf] %vm1541_vm2, %v1493_v47  ;;  %v1106_v53 = vmul.f32 %v2303_v39, %v903_v51  ;;  %v1138_v54 = vmul.f32 %v2303_v39, %v983_v52  ;;  %v746_v55 = vpop.f32.mrf.mxu0  ;;  %v826_v56 = vpop.f32.mrf.mxu1 }
 0x124   :  { %1654 = vst.msk [vmem:[#allocation2 + $0x1c0] sm:$0xf] %vm1541_vm2, %v1525_v48  ;;  %v1043_v57 = vmul.f32 %v2303_v39, %v746_v55  ;;  %v1075_v58 = vmul.f32 %v2303_v39, %v826_v56 }
 0x125   :  { %1559 = vst.msk [vmem:[#allocation2 + $0x44] sm:$0xf] %vm1541_vm2, %v1430_v49  ;;  %v1238_v59 = vadd.f32 %v2308_v40, %v1106_v53  ;;  %v1270_v60 = vadd.f32 %v2308_v40, %v1138_v54 }
 0x126   :  { %1591 = vst.msk [vmem:[#allocation2 + $0xc4] sm:$0xf] %vm1541_vm2, %v1462_v50  ;;  %v1175_v61 = vadd.f32 %v2308_v40, %v1043_v57  ;;  %v1207_v62 = vadd.f32 %v2308_v40, %v1075_v58  ;;  %v2663_v40 = vld [vmem:[%s2837_s2] ss:$0 sm:$0xff]  ;;  %s2132_s2 = smov [#allocation2]  }
 0x127   :  { %v1366_v63 = vmax.f32 %v1238_v59, 0.0  ;;  %v1398_v0 = vmax.f32 %v1270_v60, 0.0  ;;  %s1674_s3 = sshll.u32 %s2132_s2, 4  ;;  %s1675_s3 = int_to_ptr.vmem [resolvable:$true] %s1674_s3 }
 0x128   :  { %v1303_v1 = vmax.f32 %v1175_v61, 0.0  ;;  %v1335_v2 = vmax.f32 %v1207_v62, 0.0 }
 0x129   :  { %v1494_v3 = vpack.c.bf16 %v1366_v63, %v1366_v63  ;;  %v1526_v4 = vpack.c.bf16 %v1398_v0, %v1398_v0 }
 0x12a   :  { %v1431_v5 = vpack.c.bf16 %v1303_v1, %v1303_v1  ;;  %v1463_v6 = vpack.c.bf16 %v1335_v2, %v1335_v2  ;;  %v906_v7 = vpop.f32.mrf.mxu2  ;;  %v986_v8 = vpop.f32.mrf.mxu3 }
 0x12b   :  { %1623 = vst.msk [vmem:[#allocation2 + $0x144] sm:$0xf] %vm1541_vm2, %v1494_v3  ;;  %v1107_v9 = vmul.f32 %v2303_v39, %v906_v7  ;;  %v1139_v10 = vmul.f32 %v2303_v39, %v986_v8  ;;  %v748_v11 = vpop.f32.mrf.mxu0  ;;  %v828_v12 = vpop.f32.mrf.mxu1 }
 0x12c   :  { %1655 = vst.msk [vmem:[#allocation2 + $0x1c4] sm:$0xf] %vm1541_vm2, %v1526_v4  ;;  %v1044_v13 = vmul.f32 %v2663_v40, %v748_v11  ;;  %v1076_v14 = vmul.f32 %v2663_v40, %v828_v12 }
 0x12d   :  { %1560 = vst.msk [vmem:[#allocation2 + $0x48] sm:$0xf] %vm1541_vm2, %v1431_v5  ;;  %v1239_v39 = vadd.f32 %v2671_v15, %v1107_v9  ;;  %v1271_v16 = vadd.f32 %v2671_v15, %v1139_v10 }
 0x12e   :  { %1592 = vst.msk [vmem:[#allocation2 + $0xc8] sm:$0xf] %vm1541_vm2, %v1463_v6  ;;  %v1176_v17 = vadd.f32 %v2671_v15, %v1044_v13  ;;  %v1208_v18 = vadd.f32 %v2671_v15, %v1076_v14 }
 0x12f   :  { %v1367_v19 = vmax.f32 %v1239_v39, 0.0  ;;  %v1399_v20 = vmax.f32 %v1271_v16, 0.0 }
 0x130   :  { %v1304_v21 = vmax.f32 %v1176_v17, 0.0  ;;  %v1336_v22 = vmax.f32 %v1208_v18, 0.0 }
 0x131   :  { %v1495_v23 = vpack.c.bf16 %v1367_v19, %v1367_v19  ;;  %v1527_v24 = vpack.c.bf16 %v1399_v20, %v1399_v20 }
 0x132   :  { %v1432_v25 = vpack.c.bf16 %v1304_v21, %v1304_v21  ;;  %v1464_v26 = vpack.c.bf16 %v1336_v22, %v1336_v22  ;;  %v908_v27 = vpop.f32.mrf.mxu2  ;;  %v988_v28 = vpop.f32.mrf.mxu3 }
 0x133   :  { %1624 = vst.msk [vmem:[#allocation2 + $0x148] sm:$0xf] %vm1541_vm2, %v1495_v23  ;;  %v1108_v29 = vmul.f32 %v2663_v40, %v908_v27  ;;  %v1140_v30 = vmul.f32 %v2663_v40, %v988_v28  ;;  %v751_v31 = vpop.f32.mrf.mxu0  ;;  %v831_v32 = vpop.f32.mrf.mxu1 }
 0x134   :  { %1656 = vst.msk [vmem:[#allocation2 + $0x1c8] sm:$0xf] %vm1541_vm2, %v1527_v24  ;;  %v1045_v33 = vmul.f32 %v2663_v40, %v751_v31  ;;  %v1077_v34 = vmul.f32 %v2663_v40, %v831_v32 }
 0x135   :  { %1561 = vst.msk [vmem:[#allocation2 + $0x4c] sm:$0xf] %vm1541_vm2, %v1432_v25  ;;  %v1240_v35 = vadd.f32 %v2671_v15, %v1108_v29  ;;  %v1272_v36 = vadd.f32 %v2671_v15, %v1140_v30 }
 0x136   :  { %1593 = vst.msk [vmem:[#allocation2 + $0xcc] sm:$0xf] %vm1541_vm2, %v1464_v26  ;;  %v1177_v37 = vadd.f32 %v2671_v15, %v1045_v33  ;;  %v1209_v38 = vadd.f32 %v2671_v15, %v1077_v34 }
 0x137   :  { %v1368_v41 = vmax.f32 %v1240_v35, 0.0  ;;  %v1400_v42 = vmax.f32 %v1272_v36, 0.0 }
 0x138   :  { %v1305_v43 = vmax.f32 %v1177_v37, 0.0  ;;  %v1337_v44 = vmax.f32 %v1209_v38, 0.0 }
 0x139   :  { %v1496_v45 = vpack.c.bf16 %v1368_v41, %v1368_v41  ;;  %v1528_v46 = vpack.c.bf16 %v1400_v42, %v1400_v42 }
 0x13a   :  { %v1433_v47 = vpack.c.bf16 %v1305_v43, %v1305_v43  ;;  %v1465_v48 = vpack.c.bf16 %v1337_v44, %v1337_v44  ;;  %v911_v49 = vpop.f32.mrf.mxu2  ;;  %v991_v50 = vpop.f32.mrf.mxu3 }
 0x13b   :  { %1625 = vst.msk [vmem:[#allocation2 + $0x14c] sm:$0xf] %vm1541_vm2, %v1496_v45  ;;  %v1109_v51 = vmul.f32 %v2663_v40, %v911_v49  ;;  %v1141_v52 = vmul.f32 %v2663_v40, %v991_v50  ;;  %v753_v53 = vpop.f32.mrf.mxu0  ;;  %v833_v54 = vpop.f32.mrf.mxu1 }
 0x13c   :  { %1657 = vst.msk [vmem:[#allocation2 + $0x1cc] sm:$0xf] %vm1541_vm2, %v1528_v46  ;;  %v1046_v55 = vmul.f32 %v2663_v40, %v753_v53  ;;  %v1078_v56 = vmul.f32 %v2663_v40, %v833_v54 }
 0x13d   :  { %1562 = vst.msk [vmem:[#allocation2 + $0x50] sm:$0xf] %vm1541_vm2, %v1433_v47  ;;  %v1241_v57 = vadd.f32 %v2671_v15, %v1109_v51  ;;  %v1273_v58 = vadd.f32 %v2671_v15, %v1141_v52 }
 0x13e   :  { %1594 = vst.msk [vmem:[#allocation2 + $0xd0] sm:$0xf] %vm1541_vm2, %v1465_v48  ;;  %v1178_v59 = vadd.f32 %v2671_v15, %v1046_v55  ;;  %v1210_v60 = vadd.f32 %v2671_v15, %v1078_v56 }
 0x13f   :  { %v1369_v61 = vmax.f32 %v1241_v57, 0.0  ;;  %v1401_v62 = vmax.f32 %v1273_v58, 0.0 }
 0x140   :  { %v1306_v63 = vmax.f32 %v1178_v59, 0.0  ;;  %v1338_v0 = vmax.f32 %v1210_v60, 0.0 }
 0x141   :  { %v1497_v1 = vpack.c.bf16 %v1369_v61, %v1369_v61  ;;  %v1529_v2 = vpack.c.bf16 %v1401_v62, %v1401_v62 }
 0x142   :  { %v1434_v3 = vpack.c.bf16 %v1306_v63, %v1306_v63  ;;  %v1466_v4 = vpack.c.bf16 %v1338_v0, %v1338_v0  ;;  %v913_v5 = vpop.f32.mrf.mxu2  ;;  %v993_v6 = vpop.f32.mrf.mxu3 }
 0x143   :  { %1626 = vst.msk [vmem:[#allocation2 + $0x150] sm:$0xf] %vm1541_vm2, %v1497_v1  ;;  %v1110_v7 = vmul.f32 %v2663_v40, %v913_v5  ;;  %v1142_v8 = vmul.f32 %v2663_v40, %v993_v6  ;;  %v756_v9 = vpop.f32.mrf.mxu0  ;;  %v836_v10 = vpop.f32.mrf.mxu1 }
 0x144   :  { %1658 = vst.msk [vmem:[#allocation2 + $0x1d0] sm:$0xf] %vm1541_vm2, %v1529_v2  ;;  %v1047_v11 = vmul.f32 %v2663_v40, %v756_v9  ;;  %v1079_v12 = vmul.f32 %v2663_v40, %v836_v10 }
 0x145   :  { %1563 = vst.msk [vmem:[#allocation2 + $0x54] sm:$0xf] %vm1541_vm2, %v1434_v3  ;;  %v1242_v13 = vadd.f32 %v2671_v15, %v1110_v7  ;;  %v1274_v14 = vadd.f32 %v2671_v15, %v1142_v8 }
 0x146   :  { %1595 = vst.msk [vmem:[#allocation2 + $0xd4] sm:$0xf] %vm1541_vm2, %v1466_v4  ;;  %v1179_v39 = vadd.f32 %v2671_v15, %v1047_v11  ;;  %v1211_v16 = vadd.f32 %v2671_v15, %v1079_v12 }
 0x147   :  { %v1370_v17 = vmax.f32 %v1242_v13, 0.0  ;;  %v1402_v18 = vmax.f32 %v1274_v14, 0.0 }
 0x148   :  { %v1307_v19 = vmax.f32 %v1179_v39, 0.0  ;;  %v1339_v20 = vmax.f32 %v1211_v16, 0.0 }
 0x149   :  { %v1498_v21 = vpack.c.bf16 %v1370_v17, %v1370_v17  ;;  %v1530_v22 = vpack.c.bf16 %v1402_v18, %v1402_v18 }
 0x14a   :  { %v1435_v23 = vpack.c.bf16 %v1307_v19, %v1307_v19  ;;  %v1467_v24 = vpack.c.bf16 %v1339_v20, %v1339_v20  ;;  %v916_v25 = vpop.f32.mrf.mxu2  ;;  %v996_v26 = vpop.f32.mrf.mxu3 }
 0x14b   :  { %1627 = vst.msk [vmem:[#allocation2 + $0x154] sm:$0xf] %vm1541_vm2, %v1498_v21  ;;  %v1111_v27 = vmul.f32 %v2663_v40, %v916_v25  ;;  %v1143_v28 = vmul.f32 %v2663_v40, %v996_v26  ;;  %v758_v29 = vpop.f32.mrf.mxu0  ;;  %v838_v30 = vpop.f32.mrf.mxu1 }
 0x14c   :  { %1659 = vst.msk [vmem:[#allocation2 + $0x1d4] sm:$0xf] %vm1541_vm2, %v1530_v22  ;;  %v1048_v31 = vmul.f32 %v2663_v40, %v758_v29  ;;  %v1080_v32 = vmul.f32 %v2663_v40, %v838_v30 }
 0x14d   :  { %1564 = vst.msk [vmem:[#allocation2 + $0x58] sm:$0xf] %vm1541_vm2, %v1435_v23  ;;  %v1243_v33 = vadd.f32 %v2671_v15, %v1111_v27  ;;  %v1275_v34 = vadd.f32 %v2671_v15, %v1143_v28 }
 0x14e   :  { %1596 = vst.msk [vmem:[#allocation2 + $0xd8] sm:$0xf] %vm1541_vm2, %v1467_v24  ;;  %v1180_v35 = vadd.f32 %v2671_v15, %v1048_v31  ;;  %v1212_v36 = vadd.f32 %v2671_v15, %v1080_v32 }
 0x14f   :  { %v1371_v37 = vmax.f32 %v1243_v33, 0.0  ;;  %v1403_v38 = vmax.f32 %v1275_v34, 0.0 }
 0x150   :  { %v1308_v41 = vmax.f32 %v1180_v35, 0.0  ;;  %v1340_v42 = vmax.f32 %v1212_v36, 0.0 }
 0x151   :  { %v1499_v43 = vpack.c.bf16 %v1371_v37, %v1371_v37  ;;  %v1531_v44 = vpack.c.bf16 %v1403_v38, %v1403_v38 }
 0x152   :  { %v1436_v45 = vpack.c.bf16 %v1308_v41, %v1308_v41  ;;  %v1468_v46 = vpack.c.bf16 %v1340_v42, %v1340_v42  ;;  %v918_v47 = vpop.f32.mrf.mxu2  ;;  %v998_v48 = vpop.f32.mrf.mxu3 }
 0x153   :  { %1628 = vst.msk [vmem:[#allocation2 + $0x158] sm:$0xf] %vm1541_vm2, %v1499_v43  ;;  %v1112_v49 = vmul.f32 %v2663_v40, %v918_v47  ;;  %v1144_v50 = vmul.f32 %v2663_v40, %v998_v48  ;;  %v761_v51 = vpop.f32.mrf.mxu0  ;;  %v841_v52 = vpop.f32.mrf.mxu1 }
 0x154   :  { %1660 = vst.msk [vmem:[#allocation2 + $0x1d8] sm:$0xf] %vm1541_vm2, %v1531_v44  ;;  %v1049_v53 = vmul.f32 %v2663_v40, %v761_v51  ;;  %v1081_v54 = vmul.f32 %v2663_v40, %v841_v52 }
 0x155   :  { %1565 = vst.msk [vmem:[#allocation2 + $0x5c] sm:$0xf] %vm1541_vm2, %v1436_v45  ;;  %v1244_v55 = vadd.f32 %v2671_v15, %v1112_v49  ;;  %v1276_v56 = vadd.f32 %v2671_v15, %v1144_v50 }
 0x156   :  { %1597 = vst.msk [vmem:[#allocation2 + $0xdc] sm:$0xf] %vm1541_vm2, %v1468_v46  ;;  %v1181_v57 = vadd.f32 %v2671_v15, %v1049_v53  ;;  %v1213_v58 = vadd.f32 %v2671_v15, %v1081_v54 }
 0x157   :  { %v1372_v59 = vmax.f32 %v1244_v55, 0.0  ;;  %v1404_v60 = vmax.f32 %v1276_v56, 0.0 }
 0x158   :  { %v1309_v61 = vmax.f32 %v1181_v57, 0.0  ;;  %v1341_v62 = vmax.f32 %v1213_v58, 0.0 }
 0x159   :  { %v1500_v63 = vpack.c.bf16 %v1372_v59, %v1372_v59  ;;  %v1532_v0 = vpack.c.bf16 %v1404_v60, %v1404_v60 }
 0x15a   :  { %v1437_v1 = vpack.c.bf16 %v1309_v61, %v1309_v61  ;;  %v1469_v2 = vpack.c.bf16 %v1341_v62, %v1341_v62  ;;  %v921_v3 = vpop.f32.mrf.mxu2  ;;  %v1001_v4 = vpop.f32.mrf.mxu3 }
 0x15b   :  { %1629 = vst.msk [vmem:[#allocation2 + $0x15c] sm:$0xf] %vm1541_vm2, %v1500_v63  ;;  %v1113_v5 = vmul.f32 %v2663_v40, %v921_v3  ;;  %v1145_v6 = vmul.f32 %v2663_v40, %v1001_v4  ;;  %v763_v7 = vpop.f32.mrf.mxu0  ;;  %v843_v8 = vpop.f32.mrf.mxu1 }
 0x15c   :  { %1661 = vst.msk [vmem:[#allocation2 + $0x1dc] sm:$0xf] %vm1541_vm2, %v1532_v0  ;;  %v1050_v9 = vmul.f32 %v2663_v40, %v763_v7  ;;  %v1082_v10 = vmul.f32 %v2663_v40, %v843_v8 }
 0x15d   :  { %1566 = vst.msk [vmem:[#allocation2 + $0x60] sm:$0xf] %vm1541_vm2, %v1437_v1  ;;  %v1245_v11 = vadd.f32 %v2671_v15, %v1113_v5  ;;  %v1277_v12 = vadd.f32 %v2671_v15, %v1145_v6 }
 0x15e   :  { %1598 = vst.msk [vmem:[#allocation2 + $0xe0] sm:$0xf] %vm1541_vm2, %v1469_v2  ;;  %v1182_v13 = vadd.f32 %v2671_v15, %v1050_v9  ;;  %v1214_v14 = vadd.f32 %v2671_v15, %v1082_v10 }
 0x15f   :  { %v1373_v39 = vmax.f32 %v1245_v11, 0.0  ;;  %v1405_v16 = vmax.f32 %v1277_v12, 0.0 }
 0x160   :  { %v1310_v17 = vmax.f32 %v1182_v13, 0.0  ;;  %v1342_v18 = vmax.f32 %v1214_v14, 0.0 }
 0x161   :  { %v1501_v19 = vpack.c.bf16 %v1373_v39, %v1373_v39  ;;  %v1533_v20 = vpack.c.bf16 %v1405_v16, %v1405_v16 }
 0x162   :  { %v1438_v21 = vpack.c.bf16 %v1310_v17, %v1310_v17  ;;  %v1470_v22 = vpack.c.bf16 %v1342_v18, %v1342_v18  ;;  %v923_v23 = vpop.f32.mrf.mxu2  ;;  %v1003_v24 = vpop.f32.mrf.mxu3 }
 0x163   :  { %1630 = vst.msk [vmem:[#allocation2 + $0x160] sm:$0xf] %vm1541_vm2, %v1501_v19  ;;  %v1114_v25 = vmul.f32 %v2663_v40, %v923_v23  ;;  %v1146_v26 = vmul.f32 %v2663_v40, %v1003_v24  ;;  %v766_v27 = vpop.f32.mrf.mxu0  ;;  %v846_v28 = vpop.f32.mrf.mxu1 }
 0x164   :  { %1662 = vst.msk [vmem:[#allocation2 + $0x1e0] sm:$0xf] %vm1541_vm2, %v1533_v20  ;;  %v1051_v29 = vmul.f32 %v2663_v40, %v766_v27  ;;  %v1083_v30 = vmul.f32 %v2663_v40, %v846_v28 }
 0x165   :  { %1567 = vst.msk [vmem:[#allocation2 + $0x64] sm:$0xf] %vm1541_vm2, %v1438_v21  ;;  %v1246_v31 = vadd.f32 %v2671_v15, %v1114_v25  ;;  %v1278_v32 = vadd.f32 %v2671_v15, %v1146_v26 }
 0x166   :  { %1599 = vst.msk [vmem:[#allocation2 + $0xe4] sm:$0xf] %vm1541_vm2, %v1470_v22  ;;  %v1183_v33 = vadd.f32 %v2671_v15, %v1051_v29  ;;  %v1215_v34 = vadd.f32 %v2671_v15, %v1083_v30 }
 0x167   :  { %v1374_v35 = vmax.f32 %v1246_v31, 0.0  ;;  %v1406_v36 = vmax.f32 %v1278_v32, 0.0 }
 0x168   :  { %v1311_v37 = vmax.f32 %v1183_v33, 0.0  ;;  %v1343_v38 = vmax.f32 %v1215_v34, 0.0 }
 0x169   :  { %v1502_v41 = vpack.c.bf16 %v1374_v35, %v1374_v35  ;;  %v1534_v42 = vpack.c.bf16 %v1406_v36, %v1406_v36 }
 0x16a   :  { %v1439_v43 = vpack.c.bf16 %v1311_v37, %v1311_v37  ;;  %v1471_v44 = vpack.c.bf16 %v1343_v38, %v1343_v38  ;;  %v926_v45 = vpop.f32.mrf.mxu2  ;;  %v1006_v46 = vpop.f32.mrf.mxu3 }
 0x16b   :  { %1631 = vst.msk [vmem:[#allocation2 + $0x164] sm:$0xf] %vm1541_vm2, %v1502_v41  ;;  %v1115_v47 = vmul.f32 %v2663_v40, %v926_v45  ;;  %v1147_v48 = vmul.f32 %v2663_v40, %v1006_v46  ;;  %v768_v49 = vpop.f32.mrf.mxu0  ;;  %v848_v50 = vpop.f32.mrf.mxu1 }
 0x16c   :  { %1663 = vst.msk [vmem:[#allocation2 + $0x1e4] sm:$0xf] %vm1541_vm2, %v1534_v42  ;;  %v1052_v51 = vmul.f32 %v2663_v40, %v768_v49  ;;  %v1084_v52 = vmul.f32 %v2663_v40, %v848_v50 }
 0x16d   :  { %1568 = vst.msk [vmem:[#allocation2 + $0x68] sm:$0xf] %vm1541_vm2, %v1439_v43  ;;  %v1247_v53 = vadd.f32 %v2671_v15, %v1115_v47  ;;  %v1279_v54 = vadd.f32 %v2671_v15, %v1147_v48 }
 0x16e   :  { %1600 = vst.msk [vmem:[#allocation2 + $0xe8] sm:$0xf] %vm1541_vm2, %v1471_v44  ;;  %v1184_v55 = vadd.f32 %v2671_v15, %v1052_v51  ;;  %v1216_v56 = vadd.f32 %v2671_v15, %v1084_v52 }
 0x16f   :  { %v1375_v57 = vmax.f32 %v1247_v53, 0.0  ;;  %v1407_v58 = vmax.f32 %v1279_v54, 0.0 }
 0x170   :  { %v1312_v59 = vmax.f32 %v1184_v55, 0.0  ;;  %v1344_v60 = vmax.f32 %v1216_v56, 0.0 }
 0x171   :  { %v1503_v61 = vpack.c.bf16 %v1375_v57, %v1375_v57  ;;  %v1535_v62 = vpack.c.bf16 %v1407_v58, %v1407_v58 }
 0x172   :  { %v1440_v63 = vpack.c.bf16 %v1312_v59, %v1312_v59  ;;  %v1472_v0 = vpack.c.bf16 %v1344_v60, %v1344_v60  ;;  %v928_v1 = vpop.f32.mrf.mxu2  ;;  %v1008_v2 = vpop.f32.mrf.mxu3 }
 0x173   :  { %1632 = vst.msk [vmem:[#allocation2 + $0x168] sm:$0xf] %vm1541_vm2, %v1503_v61  ;;  %v1116_v3 = vmul.f32 %v2663_v40, %v928_v1  ;;  %v1148_v4 = vmul.f32 %v2663_v40, %v1008_v2  ;;  %v771_v5 = vpop.f32.mrf.mxu0  ;;  %v851_v6 = vpop.f32.mrf.mxu1 }
 0x174   :  { %1664 = vst.msk [vmem:[#allocation2 + $0x1e8] sm:$0xf] %vm1541_vm2, %v1535_v62  ;;  %v1053_v7 = vmul.f32 %v2663_v40, %v771_v5  ;;  %v1085_v8 = vmul.f32 %v2663_v40, %v851_v6 }
 0x175   :  { %1569 = vst.msk [vmem:[#allocation2 + $0x6c] sm:$0xf] %vm1541_vm2, %v1440_v63  ;;  %v1248_v9 = vadd.f32 %v2671_v15, %v1116_v3  ;;  %v1280_v10 = vadd.f32 %v2671_v15, %v1148_v4 }
 0x176   :  { %1601 = vst.msk [vmem:[#allocation2 + $0xec] sm:$0xf] %vm1541_vm2, %v1472_v0  ;;  %v1185_v11 = vadd.f32 %v2671_v15, %v1053_v7  ;;  %v1217_v12 = vadd.f32 %v2671_v15, %v1085_v8 }
 0x177   :  { %v1376_v13 = vmax.f32 %v1248_v9, 0.0  ;;  %v1408_v14 = vmax.f32 %v1280_v10, 0.0 }
 0x178   :  { %v1313_v39 = vmax.f32 %v1185_v11, 0.0  ;;  %v1345_v16 = vmax.f32 %v1217_v12, 0.0 }
 0x179   :  { %v1504_v17 = vpack.c.bf16 %v1376_v13, %v1376_v13  ;;  %v1536_v18 = vpack.c.bf16 %v1408_v14, %v1408_v14 }
 0x17a   :  { %v1441_v19 = vpack.c.bf16 %v1313_v39, %v1313_v39  ;;  %v1473_v20 = vpack.c.bf16 %v1345_v16, %v1345_v16  ;;  %v931_v21 = vpop.f32.mrf.mxu2  ;;  %v1011_v22 = vpop.f32.mrf.mxu3 }
 0x17b   :  { %1633 = vst.msk [vmem:[#allocation2 + $0x16c] sm:$0xf] %vm1541_vm2, %v1504_v17  ;;  %v1117_v23 = vmul.f32 %v2663_v40, %v931_v21  ;;  %v1149_v24 = vmul.f32 %v2663_v40, %v1011_v22  ;;  %v773_v25 = vpop.f32.mrf.mxu0  ;;  %v853_v26 = vpop.f32.mrf.mxu1 }
 0x17c   :  { %1665 = vst.msk [vmem:[#allocation2 + $0x1ec] sm:$0xf] %vm1541_vm2, %v1536_v18  ;;  %v1054_v27 = vmul.f32 %v2663_v40, %v773_v25  ;;  %v1086_v28 = vmul.f32 %v2663_v40, %v853_v26 }
 0x17d   :  { %1570 = vst.msk [vmem:[#allocation2 + $0x70] sm:$0xf] %vm1541_vm2, %v1441_v19  ;;  %v1249_v29 = vadd.f32 %v2671_v15, %v1117_v23  ;;  %v1281_v30 = vadd.f32 %v2671_v15, %v1149_v24 }
 0x17e   :  { %1602 = vst.msk [vmem:[#allocation2 + $0xf0] sm:$0xf] %vm1541_vm2, %v1473_v20  ;;  %v1186_v31 = vadd.f32 %v2671_v15, %v1054_v27  ;;  %v1218_v32 = vadd.f32 %v2671_v15, %v1086_v28 }
 0x17f   :  { %v1377_v33 = vmax.f32 %v1249_v29, 0.0  ;;  %v1409_v34 = vmax.f32 %v1281_v30, 0.0 }
 0x180   :  { %v1314_v35 = vmax.f32 %v1186_v31, 0.0  ;;  %v1346_v36 = vmax.f32 %v1218_v32, 0.0 }
 0x181   :  { %v1505_v37 = vpack.c.bf16 %v1377_v33, %v1377_v33  ;;  %v1537_v38 = vpack.c.bf16 %v1409_v34, %v1409_v34 }
 0x182   :  { %v1442_v41 = vpack.c.bf16 %v1314_v35, %v1314_v35  ;;  %v1474_v42 = vpack.c.bf16 %v1346_v36, %v1346_v36  ;;  %v933_v43 = vpop.f32.mrf.mxu2  ;;  %v1013_v44 = vpop.f32.mrf.mxu3 }
 0x183   :  { %1634 = vst.msk [vmem:[#allocation2 + $0x170] sm:$0xf] %vm1541_vm2, %v1505_v37  ;;  %v1118_v45 = vmul.f32 %v2663_v40, %v933_v43  ;;  %v1150_v46 = vmul.f32 %v2663_v40, %v1013_v44  ;;  %v776_v47 = vpop.f32.mrf.mxu0  ;;  %v856_v48 = vpop.f32.mrf.mxu1 }
 0x184   :  { %1666 = vst.msk [vmem:[#allocation2 + $0x1f0] sm:$0xf] %vm1541_vm2, %v1537_v38  ;;  %v1055_v49 = vmul.f32 %v2663_v40, %v776_v47  ;;  %v1087_v50 = vmul.f32 %v2663_v40, %v856_v48 }
 0x185   :  { %1571 = vst.msk [vmem:[#allocation2 + $0x74] sm:$0xf] %vm1541_vm2, %v1442_v41  ;;  %v1250_v51 = vadd.f32 %v2671_v15, %v1118_v45  ;;  %v1282_v52 = vadd.f32 %v2671_v15, %v1150_v46 }
 0x186   :  { %1603 = vst.msk [vmem:[#allocation2 + $0xf4] sm:$0xf] %vm1541_vm2, %v1474_v42  ;;  %v1187_v53 = vadd.f32 %v2671_v15, %v1055_v49  ;;  %v1219_v54 = vadd.f32 %v2671_v15, %v1087_v50 }
 0x187   :  { %v1378_v55 = vmax.f32 %v1250_v51, 0.0  ;;  %v1410_v56 = vmax.f32 %v1282_v52, 0.0 }
 0x188   :  { %v1315_v57 = vmax.f32 %v1187_v53, 0.0  ;;  %v1347_v58 = vmax.f32 %v1219_v54, 0.0 }
 0x189   :  { %v1506_v59 = vpack.c.bf16 %v1378_v55, %v1378_v55  ;;  %v1538_v60 = vpack.c.bf16 %v1410_v56, %v1410_v56 }
 0x18a   :  { %v1443_v61 = vpack.c.bf16 %v1315_v57, %v1315_v57  ;;  %v1475_v62 = vpack.c.bf16 %v1347_v58, %v1347_v58  ;;  %v936_v63 = vpop.f32.mrf.mxu2  ;;  %v1016_v0 = vpop.f32.mrf.mxu3 }
 0x18b   :  { %1635 = vst.msk [vmem:[#allocation2 + $0x174] sm:$0xf] %vm1541_vm2, %v1506_v59  ;;  %v1119_v1 = vmul.f32 %v2663_v40, %v936_v63  ;;  %v1151_v2 = vmul.f32 %v2663_v40, %v1016_v0  ;;  %v778_v3 = vpop.f32.mrf.mxu0  ;;  %v858_v4 = vpop.f32.mrf.mxu1 }
 0x18c   :  { %1667 = vst.msk [vmem:[#allocation2 + $0x1f4] sm:$0xf] %vm1541_vm2, %v1538_v60  ;;  %v1056_v5 = vmul.f32 %v2663_v40, %v778_v3  ;;  %v1088_v6 = vmul.f32 %v2663_v40, %v858_v4 }
 0x18d   :  { %1572 = vst.msk [vmem:[#allocation2 + $0x78] sm:$0xf] %vm1541_vm2, %v1443_v61  ;;  %v1251_v7 = vadd.f32 %v2671_v15, %v1119_v1  ;;  %v1283_v8 = vadd.f32 %v2671_v15, %v1151_v2 }
 0x18e   :  { %1604 = vst.msk [vmem:[#allocation2 + $0xf8] sm:$0xf] %vm1541_vm2, %v1475_v62  ;;  %v1188_v9 = vadd.f32 %v2671_v15, %v1056_v5  ;;  %v1220_v10 = vadd.f32 %v2671_v15, %v1088_v6 }
 0x18f   :  { %v1379_v11 = vmax.f32 %v1251_v7, 0.0  ;;  %v1411_v12 = vmax.f32 %v1283_v8, 0.0 }
 0x190   :  { %v1316_v13 = vmax.f32 %v1188_v9, 0.0  ;;  %v1348_v14 = vmax.f32 %v1220_v10, 0.0 }
 0x191   :  { %v1507_v39 = vpack.c.bf16 %v1379_v11, %v1379_v11  ;;  %v1539_v16 = vpack.c.bf16 %v1411_v12, %v1411_v12 }
 0x192   :  { %v1444_v17 = vpack.c.bf16 %v1316_v13, %v1316_v13  ;;  %v1476_v18 = vpack.c.bf16 %v1348_v14, %v1348_v14  ;;  %v938_v19 = vpop.f32.mrf.mxu2  ;;  %v1018_v20 = vpop.f32.mrf.mxu3 }
 0x193   :  { %1636 = vst.msk [vmem:[#allocation2 + $0x178] sm:$0xf] %vm1541_vm2, %v1507_v39  ;;  %v1120_v21 = vmul.f32 %v2663_v40, %v938_v19  ;;  %v1152_v22 = vmul.f32 %v2663_v40, %v1018_v20 }
 0x194   :  { %1668 = vst.msk [vmem:[#allocation2 + $0x1f8] sm:$0xf] %vm1541_vm2, %v1539_v16 }
 0x195   :  { %1573 = vst.msk [vmem:[#allocation2 + $0x7c] sm:$0xf] %vm1541_vm2, %v1444_v17  ;;  %v1252_v23 = vadd.f32 %v2671_v15, %v1120_v21  ;;  %v1284_v24 = vadd.f32 %v2671_v15, %v1152_v22 }
 0x196   :  { %1605 = vst.msk [vmem:[#allocation2 + $0xfc] sm:$0xf] %vm1541_vm2, %v1476_v18 }
 0x197   :  { %v1380_v25 = vmax.f32 %v1252_v23, 0.0  ;;  %v1412_v26 = vmax.f32 %v1284_v24, 0.0 }
 0x199   :  { %v1508_v27 = vpack.c.bf16 %v1380_v25, %v1380_v25  ;;  %v1540_v40 = vpack.c.bf16 %v1412_v26, %v1412_v26 }
 0x19b   :  { %1637 = vst.msk [vmem:[#allocation2 + $0x17c] sm:$0xf] %vm1541_vm2, %v1508_v27 }
 0x19c   :  { %1669 = vst.msk [vmem:[#allocation2 + $0x1fc] sm:$0xf] %vm1541_vm2, %v1540_v40 }
 0x19d   :  { %1682 = dma.vmem_to_hbm [thread:$0]  %s1675_s3, 8192, %s1677_s25, [#allocation3], %s2133_s26, %s2133_s26, %s2134_s27  }
 0x19e   :  { %2130 = dma.done.wait [#allocation3], 8192  }
 0x19f   :  { %2131 = vsyncadd [#allocation3], 4294959104 }
 0x1a0   :  { %1687 = vsyncpa [#allocation3], 1 }

</bundles_post_ra>
